<compile_context>
chip_gen: v5e
topology: v5e:2x2
jax: 0.10.0
libtpu: 0.0.40
codegen_flags: <defaults>
</compile_context>

<pallas_src>
import jax
import jax.numpy as jnp
from jax.experimental import pallas as pl
from jax.experimental.pallas import tpu as pltpu

ACT_DTYPE = jnp.bfloat16      # MXU operand / intermediate activation storage dtype
LANES = 128                   # all channel / feature dims padded to this (lane-dense stores)


def _round_up(x, m):
    return ((x + m - 1) // m) * m


def _pad_axis(x, axis, size):
    pad = size - x.shape[axis]
    if pad <= 0:
        return x
    widths = [(0, 0)] * x.ndim
    widths[axis] = (0, pad)
    return jnp.pad(x, widths)


# ------------------------------ Pallas kernels ------------------------------

def _conv_relu_pool_kernel(p_ref, w_ref, b_ref, o_ref):
    """p_ref: (4, TM, K) pool-quadrant im2col patches; w_ref: (K, 128); b_ref: (1, 128) f32.
    relu(max_q(patches_q @ w) + b)  ==  maxpool2x2(relu(conv + b))."""
    w = w_ref[...]
    m = jnp.dot(p_ref[0], w, preferred_element_type=jnp.float32)
    for q in range(1, 4):
        m = jnp.maximum(m, jnp.dot(p_ref[q], w, preferred_element_type=jnp.float32))
    o_ref[...] = jnp.maximum(m + b_ref[...], 0.0).astype(o_ref.dtype)


def _fc_chain_kernel(a_ref, w1_ref, b1_ref, w2_ref, b2_ref, w3_ref, b3_ref, o_ref):
    """Fused fc1+relu -> fc2+relu -> fc3; intermediates never leave VMEM/vregs."""
    h = jnp.dot(a_ref[...], w1_ref[...], preferred_element_type=jnp.float32)
    h = jnp.maximum(h + b1_ref[...], 0.0).astype(w2_ref.dtype)
    h = jnp.dot(h, w2_ref[...], preferred_element_type=jnp.float32)
    h = jnp.maximum(h + b2_ref[...], 0.0).astype(w3_ref.dtype)
    h = jnp.dot(h, w3_ref[...], preferred_element_type=jnp.float32)
    o_ref[...] = (h + b3_ref[...]).astype(o_ref.dtype)


_COMPILER_PARAMS = pltpu.CompilerParams(
    dimension_semantics=("parallel",),
    vmem_limit_bytes=32 * 1024 * 1024,
)


def conv_relu_pool(patches, w, b, *, tm_max=512):
    """patches: (4, M, K); w: (K, 128); b: (1, 128) f32 -> (M, 128) ACT_DTYPE."""
    _, M, K = patches.shape
    tm = tm_max if M > tm_max else _round_up(M, 8)
    m_pad = _round_up(M, tm)
    patches = _pad_axis(patches, 1, m_pad)
    out = pl.pallas_call(
        _conv_relu_pool_kernel,
        out_shape=jax.ShapeDtypeStruct((m_pad, LANES), ACT_DTYPE),
        grid=(m_pad // tm,),
        in_specs=[
            pl.BlockSpec((4, tm, K), lambda i: (0, i, 0)),
            pl.BlockSpec((K, LANES), lambda i: (0, 0)),
            pl.BlockSpec((1, LANES), lambda i: (0, 0)),
        ],
        out_specs=pl.BlockSpec((tm, LANES), lambda i: (i, 0)),
        compiler_params=_COMPILER_PARAMS,
    )(patches, w, b)
    return out[:M]


def fc_chain(a, w1, b1, w2, b2, w3, b3, *, tm_max=256):
    """a: (M, K1) -> f32 (M, 128) logits (first 10 lanes meaningful)."""
    M, K1 = a.shape
    tm = tm_max if M > tm_max else _round_up(M, 8)
    m_pad = _round_up(M, tm)
    a = _pad_axis(a, 0, m_pad)
    out = pl.pallas_call(
        _fc_chain_kernel,
        out_shape=jax.ShapeDtypeStruct((m_pad, LANES), jnp.float32),
        grid=(m_pad // tm,),
        in_specs=[
            pl.BlockSpec((tm, K1), lambda i: (i, 0)),
            pl.BlockSpec((K1, LANES), lambda i: (0, 0)),
            pl.BlockSpec((1, LANES), lambda i: (0, 0)),
            pl.BlockSpec((LANES, LANES), lambda i: (0, 0)),
            pl.BlockSpec((1, LANES), lambda i: (0, 0)),
            pl.BlockSpec((LANES, LANES), lambda i: (0, 0)),
            pl.BlockSpec((1, LANES), lambda i: (0, 0)),
        ],
        out_specs=pl.BlockSpec((tm, LANES), lambda i: (i, 0)),
        compiler_params=_COMPILER_PARAMS,
    )(a, w1, b1, w2, b2, w3, b3)
    return out[:M]


# ------------------------------ glue: im2col --------------------------------

def _im2col_pool_quadrants(x, kh, kw, k_pad):
    """x: (N, H, W, C) NHWC. Returns (4, N*ph*pw, k_pad) patches (ACT_DTYPE), ph, pw.
    Quadrant q = di*2+dj of the 2x2 pool window; column order = (ki, kj, c);
    row order = (n, pool_i, pool_j). XLA glue (window gathers), feeds the conv kernels."""
    N, H, W, C = x.shape
    oh, ow = H - kh + 1, W - kw + 1
    ph, pw = oh // 2, ow // 2
    cols = [x[:, ki:ki + oh, kj:kj + ow, :] for ki in range(kh) for kj in range(kw)]
    p = jnp.stack(cols, axis=3)                          # (N, oh, ow, kh*kw, C)
    p = p.reshape(N, ph, 2, pw, 2, kh * kw * C)
    p = jnp.transpose(p, (2, 4, 0, 1, 3, 5))             # (di, dj, N, ph, pw, K)
    p = p.reshape(4, N * ph * pw, kh * kw * C)
    return _pad_axis(p, 2, k_pad).astype(ACT_DTYPE), ph, pw


# ------------------------------ parameters ----------------------------------

def init_params(key):
    ks = jax.random.split(key, 10)

    def u(k, shape, fan_in):
        bound = 1.0 / jnp.sqrt(fan_in)
        return jax.random.uniform(k, shape, jnp.float32, -bound, bound)

    return {
        "conv1_w": u(ks[0], (6, 1, 5, 5), 1 * 5 * 5),
        "conv1_b": u(ks[1], (6,), 1 * 5 * 5),
        "conv2_w": u(ks[2], (16, 6, 5, 5), 6 * 5 * 5),
        "conv2_b": u(ks[3], (16,), 6 * 5 * 5),
        "fc1_w": u(ks[4], (120, 400), 400),
        "fc1_b": u(ks[5], (120,), 400),
        "fc2_w": u(ks[6], (84, 120), 120),
        "fc2_b": u(ks[7], (84,), 120),
        "fc3_w": u(ks[8], (10, 84), 84),
        "fc3_b": u(ks[9], (10,), 84),
    }


def prepare_params(p):
    """One-time re-layout: pre-transpose / pre-pad PyTorch-style params to Pallas layouts."""
    def conv_mat(w, k_pad):
        oc, ic, kh, kw = w.shape
        m = jnp.transpose(w, (2, 3, 1, 0)).reshape(kh * kw * ic, oc)    # rows: (ki, kj, ic)
        return _pad_axis(_pad_axis(m, 0, k_pad), 1, LANES).astype(ACT_DTYPE)

    def bias_row(b):
        return _pad_axis(b.reshape(1, -1), 1, LANES).astype(jnp.float32)

    # fc1 consumes the pooled conv2 output as (pool_i, pool_j, padded-channel) features, so
    # permute its input columns once here to match PyTorch's x.view(-1, 16*5*5) (C,H,W) order.
    f1 = jnp.transpose(p["fc1_w"].reshape(120, 16, 25), (2, 1, 0))       # (pos, c, oc)
    w1 = jnp.zeros((25, LANES, LANES), jnp.float32).at[:, :16, :120].set(f1)
    w1 = w1.reshape(25 * LANES, LANES).astype(ACT_DTYPE)
    w2 = jnp.zeros((LANES, LANES), jnp.float32).at[:120, :84].set(p["fc2_w"].T).astype(ACT_DTYPE)
    w3 = jnp.zeros((LANES, LANES), jnp.float32).at[:84, :10].set(p["fc3_w"].T).astype(ACT_DTYPE)
    return {
        "c1w": conv_mat(p["conv1_w"], 32),  "c1b": bias_row(p["conv1_b"]),
        "c2w": conv_mat(p["conv2_w"], 256), "c2b": bias_row(p["conv2_b"]),
        "f1w": w1, "f1b": bias_row(p["fc1_b"]),
        "f2w": w2, "f2b": bias_row(p["fc2_b"]),
        "f3w": w3, "f3b": bias_row(p["fc3_b"]),
    }


# ------------------------------ the model -----------------------------------

def net_forward(prep, x):
    """x: (N, 1, 32, 32) NCHW float32 (PyTorch layout). Returns (N, 10) float32 logits."""
    N = x.shape[0]
    x = jnp.transpose(x, (0, 2, 3, 1))                                   # NHWC, C=1
    p1, ph1, pw1 = _im2col_pool_quadrants(x, 5, 5, 32)                   # (4, N*196, 32)
    a1 = conv_relu_pool(p1, prep["c1w"], prep["c1b"])                    # (N*196, 128), 6 valid
    a1 = a1.reshape(N, ph1, pw1, LANES)[..., :6]                         # (N, 14, 14, 6) NHWC
    p2, ph2, pw2 = _im2col_pool_quadrants(a1, 5, 5, 256)                 # (4, N*25, 256)
    a2 = conv_relu_pool(p2, prep["c2w"], prep["c2b"])                    # (N*25, 128), 16 valid
    a2 = a2.reshape(N, ph2 * pw2 * LANES)                                # (N, 3200)
    logits = fc_chain(a2, prep["f1w"], prep["f1b"], prep["f2w"], prep["f2b"],
                      prep["f3w"], prep["f3b"])                          # (N, 128) f32
    return logits[:, :10]


def net_reference(params, x):
    """Pure-JAX (XLA) f32 reference matching the PyTorch module."""
    dn = ("NCHW", "OIHW", "NCHW")
    h = jax.lax.conv_general_dilated(x, params["conv1_w"], (1, 1), "VALID", dimension_numbers=dn)
    h = jax.nn.relu(h + params["conv1_b"][None, :, None, None])
    h = jax.lax.reduce_window(h, -jnp.inf, jax.lax.max, (1, 1, 2, 2), (1, 1, 2, 2), "VALID")
    h = jax.lax.conv_general_dilated(h, params["conv2_w"], (1, 1), "VALID", dimension_numbers=dn)
    h = jax.nn.relu(h + params["conv2_b"][None, :, None, None])
    h = jax.lax.reduce_window(h, -jnp.inf, jax.lax.max, (1, 1, 2, 2), (1, 1, 2, 2), "VALID")
    h = h.reshape(h.shape[0], -1)
    h = jax.nn.relu(h @ params["fc1_w"].T + params["fc1_b"])
    h = jax.nn.relu(h @ params["fc2_w"].T + params["fc2_b"])
    return h @ params["fc3_w"].T + params["fc3_b"]


if __name__ == "__main__":
    key = jax.random.PRNGKey(0)
    k_x, k_p = jax.random.split(key)
    # LeNet requires 32x32 input so the flatten is exactly 16*5*5 = 400.
    x = jax.random.normal(k_x, (2, 1, 32, 32), jnp.float32)
    params = init_params(k_p)
    prep = prepare_params(params)

    out = jax.jit(net_forward)(prep, x)
    out = jax.block_until_ready(out)
    assert out.shape == (2, 10), out.shape
    assert out.dtype == jnp.float32

    # Sanity check vs f32 XLA reference (loose tolerance: bf16 MXU operands, f32 accumulation).
    ref = net_reference(params, x)
    max_err = float(jnp.max(jnp.abs(out - ref)))
    assert max_err < 5e-2, f"mismatch vs reference: {max_err}"

    print("KERNEL_OK")
</pallas_src>

<mosaic_0001>
module attributes {stable_mosaic.version = 11 : i64} {
  func.func @_conv_relu_pool_kernel(%arg0: i32, %arg1: memref<4x392x32xbf16, #tpu.memory_space<vmem>>, %arg2: memref<32x128xbf16, #tpu.memory_space<vmem>>, %arg3: memref<1x128xf32, #tpu.memory_space<vmem>>, %arg4: memref<392x128xbf16, #tpu.memory_space<vmem>>) attributes {dimension_semantics = [#tpu.dimension_semantics<parallel>], iteration_bounds = array<i64: 1>, scalar_prefetch = 0 : i64, scratch_operands = 0 : i64, tpu.core_type = #tpu.core_type<tc>, window_params = [{transform_indices = @transform_0, window_bounds = array<i64: 4, 392, 32>}, {pipeline_mode = #tpu.pipeline_mode<synchronous>, transform_indices = @transform_1, window_bounds = array<i64: 32, 128>}, {pipeline_mode = #tpu.pipeline_mode<synchronous>, transform_indices = @transform_2, window_bounds = array<i64: 1, 128>}, {transform_indices = @transform_3, window_bounds = array<i64: 392, 128>}]} {
    %c0 = arith.constant 0 : index
    %c0_0 = arith.constant 0 : index
    %0 = vector.load %arg2[%c0, %c0_0] : memref<32x128xbf16, #tpu.memory_space<vmem>>, vector<32x128xbf16>
    %c0_1 = arith.constant 0 : index
    %c0_2 = arith.constant 0 : index
    %c0_3 = arith.constant 0 : index
    %1 = vector.load %arg1[%c0_1, %c0_2, %c0_3] : memref<4x392x32xbf16, #tpu.memory_space<vmem>>, vector<1x392x32xbf16>
    %2 = vector.shape_cast %1 : vector<1x392x32xbf16> to vector<392x32xbf16>
    %cst = arith.constant dense<0.000000e+00> : vector<392x128xf32>
    %3 = tpu.matmul %2, %0, %cst {dimension_numbers = #tpu.dot_dimension_numbers<[1], [0], [0], [1], [0, 0, 1, 1], [], []>} : vector<392x32xbf16>, vector<32x128xbf16>, vector<392x128xf32> -> vector<392x128xf32>
    %c1 = arith.constant 1 : index
    %c0_4 = arith.constant 0 : index
    %c0_5 = arith.constant 0 : index
    %4 = vector.load %arg1[%c1, %c0_4, %c0_5] : memref<4x392x32xbf16, #tpu.memory_space<vmem>>, vector<1x392x32xbf16>
    %5 = vector.shape_cast %4 : vector<1x392x32xbf16> to vector<392x32xbf16>
    %cst_6 = arith.constant dense<0.000000e+00> : vector<392x128xf32>
    %6 = tpu.matmul %5, %0, %cst_6 {dimension_numbers = #tpu.dot_dimension_numbers<[1], [0], [0], [1], [0, 0, 1, 1], [], []>} : vector<392x32xbf16>, vector<32x128xbf16>, vector<392x128xf32> -> vector<392x128xf32>
    %7 = arith.maximumf %3, %6 : vector<392x128xf32>
    %c2 = arith.constant 2 : index
    %c0_7 = arith.constant 0 : index
    %c0_8 = arith.constant 0 : index
    %8 = vector.load %arg1[%c2, %c0_7, %c0_8] : memref<4x392x32xbf16, #tpu.memory_space<vmem>>, vector<1x392x32xbf16>
    %9 = vector.shape_cast %8 : vector<1x392x32xbf16> to vector<392x32xbf16>
    %cst_9 = arith.constant dense<0.000000e+00> : vector<392x128xf32>
    %10 = tpu.matmul %9, %0, %cst_9 {dimension_numbers = #tpu.dot_dimension_numbers<[1], [0], [0], [1], [0, 0, 1, 1], [], []>} : vector<392x32xbf16>, vector<32x128xbf16>, vector<392x128xf32> -> vector<392x128xf32>
    %11 = arith.maximumf %7, %10 : vector<392x128xf32>
    %c3 = arith.constant 3 : index
    %c0_10 = arith.constant 0 : index
    %c0_11 = arith.constant 0 : index
    %12 = vector.load %arg1[%c3, %c0_10, %c0_11] : memref<4x392x32xbf16, #tpu.memory_space<vmem>>, vector<1x392x32xbf16>
    %13 = vector.shape_cast %12 : vector<1x392x32xbf16> to vector<392x32xbf16>
    %cst_12 = arith.constant dense<0.000000e+00> : vector<392x128xf32>
    %14 = tpu.matmul %13, %0, %cst_12 {dimension_numbers = #tpu.dot_dimension_numbers<[1], [0], [0], [1], [0, 0, 1, 1], [], []>} : vector<392x32xbf16>, vector<32x128xbf16>, vector<392x128xf32> -> vector<392x128xf32>
    %15 = arith.maximumf %11, %14 : vector<392x128xf32>
    %c0_13 = arith.constant 0 : index
    %c0_14 = arith.constant 0 : index
    %16 = vector.load %arg3[%c0_13, %c0_14] : memref<1x128xf32, #tpu.memory_space<vmem>>, vector<1x128xf32>
    %17 = vector.broadcast %16 : vector<1x128xf32> to vector<392x128xf32>
    %18 = arith.addf %15, %17 : vector<392x128xf32>
    %cst_15 = arith.constant 0.000000e+00 : f32
    %19 = vector.broadcast %cst_15 : f32 to vector<392x128xf32>
    %20 = arith.maximumf %18, %19 : vector<392x128xf32>
    %21 = arith.truncf %20 : vector<392x128xf32> to vector<392x128xbf16>
    %c0_16 = arith.constant 0 : index
    %c0_17 = arith.constant 0 : index
    %22 = vector.load %arg4[%c0_16, %c0_17] : memref<392x128xbf16, #tpu.memory_space<vmem>>, vector<392x128xbf16>
    tpu.vector_store %arg4[%c0_16, %c0_17], %21 {strides = array<i32>} : memref<392x128xbf16, #tpu.memory_space<vmem>>, vector<392x128xbf16>,
    return
  }
  func.func @transform_0(%arg0: i32) -> (i32, i32, i32) {
    %c0_i32 = arith.constant 0 : i32
    %c0_i32_0 = arith.constant 0 : i32
    %c0_i32_1 = arith.constant 0 : i32
    return %c0_i32, %arg0, %c0_i32_0 : i32, i32, i32
  }
  func.func @transform_1(%arg0: i32) -> (i32, i32) {
    %c0_i32 = arith.constant 0 : i32
    %c0_i32_0 = arith.constant 0 : i32
    %c0_i32_1 = arith.constant 0 : i32
    return %c0_i32, %c0_i32_0 : i32, i32
  }
  func.func @transform_2(%arg0: i32) -> (i32, i32) {
    %c0_i32 = arith.constant 0 : i32
    %c0_i32_0 = arith.constant 0 : i32
    %c0_i32_1 = arith.constant 0 : i32
    return %c0_i32, %c0_i32_0 : i32, i32
  }
  func.func @transform_3(%arg0: i32) -> (i32, i32) {
    %c0_i32 = arith.constant 0 : i32
    %c0_i32_0 = arith.constant 0 : i32
    return %arg0, %c0_i32 : i32, i32
  }
}

module attributes {stable_mosaic.version = 11 : i64} {
  func.func @_conv_relu_pool_kernel(%arg0: i32, %arg1: memref<4x56x256xbf16, #tpu.memory_space<vmem>>, %arg2: memref<256x128xbf16, #tpu.memory_space<vmem>>, %arg3: memref<1x128xf32, #tpu.memory_space<vmem>>, %arg4: memref<56x128xbf16, #tpu.memory_space<vmem>>) attributes {dimension_semantics = [#tpu.dimension_semantics<parallel>], iteration_bounds = array<i64: 1>, scalar_prefetch = 0 : i64, scratch_operands = 0 : i64, tpu.core_type = #tpu.core_type<tc>, window_params = [{transform_indices = @transform_0, window_bounds = array<i64: 4, 56, 256>}, {pipeline_mode = #tpu.pipeline_mode<synchronous>, transform_indices = @transform_1, window_bounds = array<i64: 256, 128>}, {pipeline_mode = #tpu.pipeline_mode<synchronous>, transform_indices = @transform_2, window_bounds = array<i64: 1, 128>}, {transform_indices = @transform_3, window_bounds = array<i64: 56, 128>}]} {
    %c0 = arith.constant 0 : index
    %c0_0 = arith.constant 0 : index
    %0 = vector.load %arg2[%c0, %c0_0] : memref<256x128xbf16, #tpu.memory_space<vmem>>, vector<256x128xbf16>
    %c0_1 = arith.constant 0 : index
    %c0_2 = arith.constant 0 : index
    %c0_3 = arith.constant 0 : index
    %1 = vector.load %arg1[%c0_1, %c0_2, %c0_3] : memref<4x56x256xbf16, #tpu.memory_space<vmem>>, vector<1x56x256xbf16>
    %2 = vector.shape_cast %1 : vector<1x56x256xbf16> to vector<56x256xbf16>
    %cst = arith.constant dense<0.000000e+00> : vector<56x128xf32>
    %3 = tpu.matmul %2, %0, %cst {dimension_numbers = #tpu.dot_dimension_numbers<[1], [0], [0], [1], [0, 0, 1, 1], [], []>} : vector<56x256xbf16>, vector<256x128xbf16>, vector<56x128xf32> -> vector<56x128xf32>
    %c1 = arith.constant 1 : index
    %c0_4 = arith.constant 0 : index
    %c0_5 = arith.constant 0 : index
    %4 = vector.load %arg1[%c1, %c0_4, %c0_5] : memref<4x56x256xbf16, #tpu.memory_space<vmem>>, vector<1x56x256xbf16>
    %5 = vector.shape_cast %4 : vector<1x56x256xbf16> to vector<56x256xbf16>
    %cst_6 = arith.constant dense<0.000000e+00> : vector<56x128xf32>
    %6 = tpu.matmul %5, %0, %cst_6 {dimension_numbers = #tpu.dot_dimension_numbers<[1], [0], [0], [1], [0, 0, 1, 1], [], []>} : vector<56x256xbf16>, vector<256x128xbf16>, vector<56x128xf32> -> vector<56x128xf32>
    %7 = arith.maximumf %3, %6 : vector<56x128xf32>
    %c2 = arith.constant 2 : index
    %c0_7 = arith.constant 0 : index
    %c0_8 = arith.constant 0 : index
    %8 = vector.load %arg1[%c2, %c0_7, %c0_8] : memref<4x56x256xbf16, #tpu.memory_space<vmem>>, vector<1x56x256xbf16>
    %9 = vector.shape_cast %8 : vector<1x56x256xbf16> to vector<56x256xbf16>
    %cst_9 = arith.constant dense<0.000000e+00> : vector<56x128xf32>
    %10 = tpu.matmul %9, %0, %cst_9 {dimension_numbers = #tpu.dot_dimension_numbers<[1], [0], [0], [1], [0, 0, 1, 1], [], []>} : vector<56x256xbf16>, vector<256x128xbf16>, vector<56x128xf32> -> vector<56x128xf32>
    %11 = arith.maximumf %7, %10 : vector<56x128xf32>
    %c3 = arith.constant 3 : index
    %c0_10 = arith.constant 0 : index
    %c0_11 = arith.constant 0 : index
    %12 = vector.load %arg1[%c3, %c0_10, %c0_11] : memref<4x56x256xbf16, #tpu.memory_space<vmem>>, vector<1x56x256xbf16>
    %13 = vector.shape_cast %12 : vector<1x56x256xbf16> to vector<56x256xbf16>
    %cst_12 = arith.constant dense<0.000000e+00> : vector<56x128xf32>
    %14 = tpu.matmul %13, %0, %cst_12 {dimension_numbers = #tpu.dot_dimension_numbers<[1], [0], [0], [1], [0, 0, 1, 1], [], []>} : vector<56x256xbf16>, vector<256x128xbf16>, vector<56x128xf32> -> vector<56x128xf32>
    %15 = arith.maximumf %11, %14 : vector<56x128xf32>
    %c0_13 = arith.constant 0 : index
    %c0_14 = arith.constant 0 : index
    %16 = vector.load %arg3[%c0_13, %c0_14] : memref<1x128xf32, #tpu.memory_space<vmem>>, vector<1x128xf32>
    %17 = vector.broadcast %16 : vector<1x128xf32> to vector<56x128xf32>
    %18 = arith.addf %15, %17 : vector<56x128xf32>
    %cst_15 = arith.constant 0.000000e+00 : f32
    %19 = vector.broadcast %cst_15 : f32 to vector<56x128xf32>
    %20 = arith.maximumf %18, %19 : vector<56x128xf32>
    %21 = arith.truncf %20 : vector<56x128xf32> to vector<56x128xbf16>
    %c0_16 = arith.constant 0 : index
    %c0_17 = arith.constant 0 : index
    %22 = vector.load %arg4[%c0_16, %c0_17] : memref<56x128xbf16, #tpu.memory_space<vmem>>, vector<56x128xbf16>
    tpu.vector_store %arg4[%c0_16, %c0_17], %21 {strides = array<i32>} : memref<56x128xbf16, #tpu.memory_space<vmem>>, vector<56x128xbf16>,
    return
  }
  func.func @transform_0(%arg0: i32) -> (i32, i32, i32) {
    %c0_i32 = arith.constant 0 : i32
    %c0_i32_0 = arith.constant 0 : i32
    %c0_i32_1 = arith.constant 0 : i32
    return %c0_i32, %arg0, %c0_i32_0 : i32, i32, i32
  }
  func.func @transform_1(%arg0: i32) -> (i32, i32) {
    %c0_i32 = arith.constant 0 : i32
    %c0_i32_0 = arith.constant 0 : i32
    %c0_i32_1 = arith.constant 0 : i32
    return %c0_i32, %c0_i32_0 : i32, i32
  }
  func.func @transform_2(%arg0: i32) -> (i32, i32) {
    %c0_i32 = arith.constant 0 : i32
    %c0_i32_0 = arith.constant 0 : i32
    %c0_i32_1 = arith.constant 0 : i32
    return %c0_i32, %c0_i32_0 : i32, i32
  }
  func.func @transform_3(%arg0: i32) -> (i32, i32) {
    %c0_i32 = arith.constant 0 : i32
    %c0_i32_0 = arith.constant 0 : i32
    return %arg0, %c0_i32 : i32, i32
  }
}

module attributes {stable_mosaic.version = 11 : i64} {
  func.func @_fc_chain_kernel(%arg0: i32, %arg1: memref<8x3200xbf16, #tpu.memory_space<vmem>>, %arg2: memref<3200x128xbf16, #tpu.memory_space<vmem>>, %arg3: memref<1x128xf32, #tpu.memory_space<vmem>>, %arg4: memref<128x128xbf16, #tpu.memory_space<vmem>>, %arg5: memref<1x128xf32, #tpu.memory_space<vmem>>, %arg6: memref<128x128xbf16, #tpu.memory_space<vmem>>, %arg7: memref<1x128xf32, #tpu.memory_space<vmem>>, %arg8: memref<8x128xf32, #tpu.memory_space<vmem>>) attributes {dimension_semantics = [#tpu.dimension_semantics<parallel>], iteration_bounds = array<i64: 1>, scalar_prefetch = 0 : i64, scratch_operands = 0 : i64, tpu.core_type = #tpu.core_type<tc>, window_params = [{transform_indices = @transform_0, window_bounds = array<i64: 8, 3200>}, {pipeline_mode = #tpu.pipeline_mode<synchronous>, transform_indices = @transform_1, window_bounds = array<i64: 3200, 128>}, {pipeline_mode = #tpu.pipeline_mode<synchronous>, transform_indices = @transform_2, window_bounds = array<i64: 1, 128>}, {pipeline_mode = #tpu.pipeline_mode<synchronous>, transform_indices = @transform_3, window_bounds = array<i64: 128, 128>}, {pipeline_mode = #tpu.pipeline_mode<synchronous>, transform_indices = @transform_4, window_bounds = array<i64: 1, 128>}, {pipeline_mode = #tpu.pipeline_mode<synchronous>, transform_indices = @transform_5, window_bounds = array<i64: 128, 128>}, {pipeline_mode = #tpu.pipeline_mode<synchronous>, transform_indices = @transform_6, window_bounds = array<i64: 1, 128>}, {transform_indices = @transform_7, window_bounds = array<i64: 8, 128>}]} {
    %c0 = arith.constant 0 : index
    %c0_0 = arith.constant 0 : index
    %0 = vector.load %arg1[%c0, %c0_0] : memref<8x3200xbf16, #tpu.memory_space<vmem>>, vector<8x3200xbf16>
    %c0_1 = arith.constant 0 : index
    %c0_2 = arith.constant 0 : index
    %1 = vector.load %arg2[%c0_1, %c0_2] : memref<3200x128xbf16, #tpu.memory_space<vmem>>, vector<3200x128xbf16>
    %cst = arith.constant dense<0.000000e+00> : vector<8x128xf32>
    %2 = tpu.matmul %0, %1, %cst {dimension_numbers = #tpu.dot_dimension_numbers<[1], [0], [0], [1], [0, 0, 1, 1], [], []>} : vector<8x3200xbf16>, vector<3200x128xbf16>, vector<8x128xf32> -> vector<8x128xf32>
    %c0_3 = arith.constant 0 : index
    %c0_4 = arith.constant 0 : index
    %3 = vector.load %arg3[%c0_3, %c0_4] : memref<1x128xf32, #tpu.memory_space<vmem>>, vector<1x128xf32>
    %4 = vector.broadcast %3 : vector<1x128xf32> to vector<8x128xf32>
    %5 = arith.addf %2, %4 : vector<8x128xf32>
    %cst_5 = arith.constant 0.000000e+00 : f32
    %6 = vector.broadcast %cst_5 : f32 to vector<8x128xf32>
    %7 = arith.maximumf %5, %6 : vector<8x128xf32>
    %8 = arith.truncf %7 : vector<8x128xf32> to vector<8x128xbf16>
    %c0_6 = arith.constant 0 : index
    %c0_7 = arith.constant 0 : index
    %9 = vector.load %arg4[%c0_6, %c0_7] : memref<128x128xbf16, #tpu.memory_space<vmem>>, vector<128x128xbf16>
    %cst_8 = arith.constant dense<0.000000e+00> : vector<8x128xf32>
    %10 = tpu.matmul %8, %9, %cst_8 {dimension_numbers = #tpu.dot_dimension_numbers<[1], [0], [0], [1], [0, 0, 1, 1], [], []>} : vector<8x128xbf16>, vector<128x128xbf16>, vector<8x128xf32> -> vector<8x128xf32>
    %c0_9 = arith.constant 0 : index
    %c0_10 = arith.constant 0 : index
    %11 = vector.load %arg5[%c0_9, %c0_10] : memref<1x128xf32, #tpu.memory_space<vmem>>, vector<1x128xf32>
    %12 = vector.broadcast %11 : vector<1x128xf32> to vector<8x128xf32>
    %13 = arith.addf %10, %12 : vector<8x128xf32>
    %cst_11 = arith.constant 0.000000e+00 : f32
    %14 = vector.broadcast %cst_11 : f32 to vector<8x128xf32>
    %15 = arith.maximumf %13, %14 : vector<8x128xf32>
    %16 = arith.truncf %15 : vector<8x128xf32> to vector<8x128xbf16>
    %c0_12 = arith.constant 0 : index
    %c0_13 = arith.constant 0 : index
    %17 = vector.load %arg6[%c0_12, %c0_13] : memref<128x128xbf16, #tpu.memory_space<vmem>>, vector<128x128xbf16>
    %cst_14 = arith.constant dense<0.000000e+00> : vector<8x128xf32>
    %18 = tpu.matmul %16, %17, %cst_14 {dimension_numbers = #tpu.dot_dimension_numbers<[1], [0], [0], [1], [0, 0, 1, 1], [], []>} : vector<8x128xbf16>, vector<128x128xbf16>, vector<8x128xf32> -> vector<8x128xf32>
    %c0_15 = arith.constant 0 : index
    %c0_16 = arith.constant 0 : index
    %19 = vector.load %arg7[%c0_15, %c0_16] : memref<1x128xf32, #tpu.memory_space<vmem>>, vector<1x128xf32>
    %20 = vector.broadcast %19 : vector<1x128xf32> to vector<8x128xf32>
    %21 = arith.addf %18, %20 : vector<8x128xf32>
    %c0_17 = arith.constant 0 : index
    %c0_18 = arith.constant 0 : index
    %22 = vector.load %arg8[%c0_17, %c0_18] : memref<8x128xf32, #tpu.memory_space<vmem>>, vector<8x128xf32>
    tpu.vector_store %arg8[%c0_17, %c0_18], %21 {strides = array<i32>} : memref<8x128xf32, #tpu.memory_space<vmem>>, vector<8x128xf32>,
    return
  }
  func.func @transform_0(%arg0: i32) -> (i32, i32) {
    %c0_i32 = arith.constant 0 : i32
    %c0_i32_0 = arith.constant 0 : i32
    return %arg0, %c0_i32 : i32, i32
  }
  func.func @transform_1(%arg0: i32) -> (i32, i32) {
    %c0_i32 = arith.constant 0 : i32
    %c0_i32_0 = arith.constant 0 : i32
    %c0_i32_1 = arith.constant 0 : i32
    return %c0_i32, %c0_i32_0 : i32, i32
  }
  func.func @transform_2(%arg0: i32) -> (i32, i32) {
    %c0_i32 = arith.constant 0 : i32
    %c0_i32_0 = arith.constant 0 : i32
    %c0_i32_1 = arith.constant 0 : i32
    return %c0_i32, %c0_i32_0 : i32, i32
  }
  func.func @transform_3(%arg0: i32) -> (i32, i32) {
    %c0_i32 = arith.constant 0 : i32
    %c0_i32_0 = arith.constant 0 : i32
    %c0_i32_1 = arith.constant 0 : i32
    return %c0_i32, %c0_i32_0 : i32, i32
  }
  func.func @transform_4(%arg0: i32) -> (i32, i32) {
    %c0_i32 = arith.constant 0 : i32
    %c0_i32_0 = arith.constant 0 : i32
    %c0_i32_1 = arith.constant 0 : i32
    return %c0_i32, %c0_i32_0 : i32, i32
  }
  func.func @transform_5(%arg0: i32) -> (i32, i32) {
    %c0_i32 = arith.constant 0 : i32
    %c0_i32_0 = arith.constant 0 : i32
    %c0_i32_1 = arith.constant 0 : i32
    return %c0_i32, %c0_i32_0 : i32, i32
  }
  func.func @transform_6(%arg0: i32) -> (i32, i32) {
    %c0_i32 = arith.constant 0 : i32
    %c0_i32_0 = arith.constant 0 : i32
    %c0_i32_1 = arith.constant 0 : i32
    return %c0_i32, %c0_i32_0 : i32, i32
  }
  func.func @transform_7(%arg0: i32) -> (i32, i32) {
    %c0_i32 = arith.constant 0 : i32
    %c0_i32_0 = arith.constant 0 : i32
    return %arg0, %c0_i32 : i32, i32
  }
}

</mosaic_0001>

<bundles_post_ra>
// kernel: net_forward.3
= control target key start
LH: loop header
LB: loop body
LE: loop exit
PB: predicated region body
PF: predicated region fallthrough
CT: control target
= control target key end

     0   :  { %vm203_vm0 = vcmask 261120   ;;  %s3348_s1 = inlined_call_operand.vmem [shape: bf16[32,128], index: 1, kind: input, shape index: {}]   ;;  %s3349_s0 = inlined_call_operand.vmem [shape: bf16[4,392,32], index: 0, kind: input, shape index: {}]   ;;  %s3350_s2 = inlined_call_operand.vmem [shape: f32[1,128], index: 2, kind: input, shape index: {}]   ;;  %s3351_s3 = inlined_call_operand.vmem [shape: bf16[392,128], index: 3, kind: output, shape index: {}]  }
   0x1   :  { %v2546_v0 = vld [vmem:[%s3348_s1 + $0x8] sm:$0xff]  ;;  %v2545_v1 = vld [vmem:[%s3348_s1] sm:$0xff]  ;;  %v2596_v8 = vld [vmem:[%s3349_s0 + $0x190] sm:$0xff] }
   0x2   :  { %285 = vmatpush.bf16.msra.mxu0 %v2546_v0  ;;  %666 = vmatpush.bf16.msra.mxu1 %v2546_v0  ;;  %v2547_v2 = vld [vmem:[%s3349_s0] sm:$0xff]  ;;  %v2595_v4 = vld [vmem:[%s3349_s0 + $0x188] sm:$0xff]  ;;  %v2620_v9 = vld [vmem:[%s3349_s0 + $0x254] sm:$0xff] }
   0x3   :  { %1096 = vmatpush.bf16.msra.mxu2 %v2546_v0  ;;  %1526 = vmatpush.bf16.msra.mxu3 %v2546_v0  ;;  %v2571_v3 = vld [vmem:[%s3349_s0 + $0xc4] sm:$0xff]  ;;  %v2619_v5 = vld [vmem:[%s3349_s0 + $0x24c] sm:$0xff]  ;;  %v2573_v11 = vld [vmem:[%s3349_s0 + $0xd4] sm:$0xff] }
   0x4   :  { %v2548_v6 = vld [vmem:[%s3349_s0 + $0x8] sm:$0xff]  ;;  %v2549_v10 = vld [vmem:[%s3349_s0 + $0x10] sm:$0xff]  ;;  %v2597_v12 = vld [vmem:[%s3349_s0 + $0x198] sm:$0xff] }
   0x5   :  { %v2572_v7 = vld [vmem:[%s3349_s0 + $0xcc] sm:$0xff]  ;;  %v2621_v13 = vld [vmem:[%s3349_s0 + $0x25c] sm:$0xff]  ;;  %v2622_v17 = vld [vmem:[%s3349_s0 + $0x264] sm:$0xff] }
   0x6   :  { %286 = vmatpush.bf16.msra.mxu0 %v2545_v1  ;;  %667 = vmatpush.bf16.msra.mxu1 %v2545_v1  ;;  %v2550_v14 = vld [vmem:[%s3349_s0 + $0x18] sm:$0xff]  ;;  %v2598_v16 = vld [vmem:[%s3349_s0 + $0x1a0] sm:$0xff]  ;;  %v2599_v20 = vld [vmem:[%s3349_s0 + $0x1a8] sm:$0xff] }
   0x7   :  { %1097 = vmatpush.bf16.msra.mxu2 %v2545_v1  ;;  %1527 = vmatpush.bf16.msra.mxu3 %v2545_v1  ;;  %v2574_v15 = vld [vmem:[%s3349_s0 + $0xdc] sm:$0xff]  ;;  %v2575_v19 = vld [vmem:[%s3349_s0 + $0xe4] sm:$0xff]  ;;  %v2623_v21 = vld [vmem:[%s3349_s0 + $0x26c] sm:$0xff] }
   0x8   :  { %v2551_v18 = vld [vmem:[%s3349_s0 + $0x20] sm:$0xff]  ;;  %v2552_v22 = vld [vmem:[%s3349_s0 + $0x28] sm:$0xff]  ;;  %v2600_v24 = vld [vmem:[%s3349_s0 + $0x1b0] sm:$0xff] }
   0x9   :  { %2010 = vmatmul.msk.bf16.vlgmr.msra.gmra.mxu0 %vm203_vm0, %v2547_v2  ;;  %2180 = vmatmul.msk.bf16.vlgmr.msra.gmra.mxu1 %vm203_vm0, %v2571_v3  ;;  %v2576_v23 = vld [vmem:[%s3349_s0 + $0xec] sm:$0xff]  ;;  %v2624_v25 = vld [vmem:[%s3349_s0 + $0x274] sm:$0xff]  ;;  %v2625_v29 = vld [vmem:[%s3349_s0 + $0x27c] sm:$0xff] }
   0xa   :  { %2350 = vmatmul.msk.bf16.vlgmr.msra.gmra.mxu2 %vm203_vm0, %v2595_v4  ;;  %2520 = vmatmul.msk.bf16.vlgmr.msra.gmra.mxu3 %vm203_vm0, %v2619_v5  ;;  %v2553_v26 = vld [vmem:[%s3349_s0 + $0x30] sm:$0xff]  ;;  %v2601_v28 = vld [vmem:[%s3349_s0 + $0x1b8] sm:$0xff]  ;;  %v2602_v32 = vld [vmem:[%s3349_s0 + $0x1c0] sm:$0xff] }
   0xb   :  { %v2577_v27 = vld [vmem:[%s3349_s0 + $0xf4] sm:$0xff]  ;;  %v2578_v31 = vld [vmem:[%s3349_s0 + $0xfc] sm:$0xff]  ;;  %v2626_v33 = vld [vmem:[%s3349_s0 + $0x284] sm:$0xff] }
   0xc   :  { %v2554_v30 = vld [vmem:[%s3349_s0 + $0x38] sm:$0xff]  ;;  %v2555_v34 = vld [vmem:[%s3349_s0 + $0x40] sm:$0xff]  ;;  %v2603_v38 = vld [vmem:[%s3349_s0 + $0x1c8] sm:$0xff] }
   0xd   :  { %v2579_v35 = vld [vmem:[%s3349_s0 + $0x104] sm:$0xff]  ;;  %v2627_v39 = vld [vmem:[%s3349_s0 + $0x28c] sm:$0xff]  ;;  %v2961_v47 = vld [vmem:[%s3350_s2] ss:$0 sm:$0xff] }
   0xe   :  { %v2556_v51 = vld [vmem:[%s3349_s0 + $0x48] sm:$0xff]  ;;  %v2604_v56 = vld [vmem:[%s3349_s0 + $0x1d0] sm:$0xff] }
   0xf   :  { %v2580_v52 = vld [vmem:[%s3349_s0 + $0x10c] sm:$0xff]  ;;  %v2628_v57 = vld [vmem:[%s3349_s0 + $0x294] sm:$0xff] }
  0x19   :  { %2011 = vmatmul.msk.bf16.gmra.mxu0 %vm203_vm0, %v2548_v6  ;;  %2181 = vmatmul.msk.bf16.gmra.mxu1 %vm203_vm0, %v2572_v7 }
  0x1a   :  { %2351 = vmatmul.msk.bf16.gmra.mxu2 %vm203_vm0, %v2596_v8  ;;  %2521 = vmatmul.msk.bf16.gmra.mxu3 %vm203_vm0, %v2620_v9 }
  0x29   :  { %2012 = vmatmul.msk.bf16.gmra.mxu0 %vm203_vm0, %v2549_v10  ;;  %2182 = vmatmul.msk.bf16.gmra.mxu1 %vm203_vm0, %v2573_v11  ;;  %v2557_v10 = vld [vmem:[%s3349_s0 + $0x50] sm:$0xff] }
  0x2a   :  { %2352 = vmatmul.msk.bf16.gmra.mxu2 %vm203_vm0, %v2597_v12  ;;  %2522 = vmatmul.msk.bf16.gmra.mxu3 %vm203_vm0, %v2621_v13  ;;  %v2581_v11 = vld [vmem:[%s3349_s0 + $0x114] sm:$0xff] }
  0x39   :  { %2013 = vmatmul.msk.bf16.gmra.mxu0 %vm203_vm0, %v2550_v14  ;;  %2183 = vmatmul.msk.bf16.gmra.mxu1 %vm203_vm0, %v2574_v15  ;;  %v2605_v15 = vld [vmem:[%s3349_s0 + $0x1d8] sm:$0xff] }
  0x3a   :  { %2353 = vmatmul.msk.bf16.gmra.mxu2 %vm203_vm0, %v2598_v16  ;;  %2523 = vmatmul.msk.bf16.gmra.mxu3 %vm203_vm0, %v2622_v17  ;;  %v2629_v16 = vld [vmem:[%s3349_s0 + $0x29c] sm:$0xff] }
  0x49   :  { %2014 = vmatmul.msk.bf16.gmra.mxu0 %vm203_vm0, %v2551_v18  ;;  %2184 = vmatmul.msk.bf16.gmra.mxu1 %vm203_vm0, %v2575_v19 }
  0x4a   :  { %2354 = vmatmul.msk.bf16.gmra.mxu2 %vm203_vm0, %v2599_v20  ;;  %2524 = vmatmul.msk.bf16.gmra.mxu3 %vm203_vm0, %v2623_v21 }
  0x59   :  { %2015 = vmatmul.msk.bf16.gmra.mxu0 %vm203_vm0, %v2552_v22  ;;  %2185 = vmatmul.msk.bf16.gmra.mxu1 %vm203_vm0, %v2576_v23 }
  0x5a   :  { %2355 = vmatmul.msk.bf16.gmra.mxu2 %vm203_vm0, %v2600_v24  ;;  %2525 = vmatmul.msk.bf16.gmra.mxu3 %vm203_vm0, %v2624_v25 }
  0x69   :  { %2016 = vmatmul.msk.bf16.gmra.mxu0 %vm203_vm0, %v2553_v26  ;;  %2186 = vmatmul.msk.bf16.gmra.mxu1 %vm203_vm0, %v2577_v27 }
  0x6a   :  { %2356 = vmatmul.msk.bf16.gmra.mxu2 %vm203_vm0, %v2601_v28  ;;  %2526 = vmatmul.msk.bf16.gmra.mxu3 %vm203_vm0, %v2625_v29 }
  0x79   :  { %2017 = vmatmul.msk.bf16.gmra.mxu0 %vm203_vm0, %v2554_v30  ;;  %2187 = vmatmul.msk.bf16.gmra.mxu1 %vm203_vm0, %v2578_v31 }
  0x7a   :  { %2357 = vmatmul.msk.bf16.gmra.mxu2 %vm203_vm0, %v2602_v32  ;;  %2527 = vmatmul.msk.bf16.gmra.mxu3 %vm203_vm0, %v2626_v33  ;;  %v2558_v33 = vld [vmem:[%s3349_s0 + $0x58] sm:$0xff] }
  0x86   :  { %v288_v36 = vpop.f32.mrf.mxu0  ;;  %v669_v37 = vpop.f32.mrf.mxu1 }
  0x87   :  { %v793_v40 = vmax.f32 %v288_v36, %v669_v37 }
  0x89   :  { %2018 = vmatmul.msk.bf16.gmra.mxu0 %vm203_vm0, %v2555_v34  ;;  %2188 = vmatmul.msk.bf16.gmra.mxu1 %vm203_vm0, %v2579_v35  ;;  %v2582_v34 = vld [vmem:[%s3349_s0 + $0x11c] sm:$0xff] }
  0x8a   :  { %2358 = vmatmul.msk.bf16.gmra.mxu2 %vm203_vm0, %v2603_v38  ;;  %2528 = vmatmul.msk.bf16.gmra.mxu3 %vm203_vm0, %v2627_v39  ;;  %v2606_v38 = vld [vmem:[%s3349_s0 + $0x1e0] sm:$0xff] }
  0x8b   :  { %v2630_v39 = vld [vmem:[%s3349_s0 + $0x2a4] sm:$0xff] }
  0x8d   :  { %v1099_v41 = vpop.f32.mrf.mxu2  ;;  %v1529_v42 = vpop.f32.mrf.mxu3 }
  0x8e   :  { %v290_v43 = vpop.f32.mrf.mxu0  ;;  %v671_v44 = vpop.f32.mrf.mxu1  ;;  %v1223_v45 = vmax.f32 %v793_v40, %v1099_v41 }
  0x8f   :  { %v794_v48 = vmax.f32 %v290_v43, %v671_v44 }
  0x90   :  { %v1653_v46 = vmax.f32 %v1223_v45, %v1529_v42 }
  0x92   :  { %v1706_v58 = vadd.f32 %v2961_v47, %v1653_v46 }
  0x94   :  { %v1755_v61 = vmax.f32 %v1706_v58, 0.0  ;;  %v2583_v58 = vld [vmem:[%s3349_s0 + $0x124] sm:$0xff] }
  0x95   :  { %v1101_v49 = vpop.f32.mrf.mxu2  ;;  %v1531_v50 = vpop.f32.mrf.mxu3 }
  0x96   :  { %v1224_v53 = vmax.f32 %v794_v48, %v1101_v49  ;;  %v293_v54 = vpop.f32.mrf.mxu0  ;;  %v674_v55 = vpop.f32.mrf.mxu1 }
  0x97   :  { %v795_v63 = vmax.f32 %v293_v54, %v674_v55 }
  0x98   :  { %v1654_v59 = vmax.f32 %v1224_v53, %v1531_v50 }
  0x99   :  { %2019 = vmatmul.msk.bf16.gmra.mxu0 %vm203_vm0, %v2556_v51  ;;  %2189 = vmatmul.msk.bf16.gmra.mxu1 %vm203_vm0, %v2580_v52 }
  0x9a   :  { %v1707_v60 = vadd.f32 %v2961_v47, %v1654_v59  ;;  %2359 = vmatmul.msk.bf16.gmra.mxu2 %vm203_vm0, %v2604_v56  ;;  %2529 = vmatmul.msk.bf16.gmra.mxu3 %vm203_vm0, %v2628_v57  ;;  %v2559_v57 = vld [vmem:[%s3349_s0 + $0x60] sm:$0xff] }
  0x9c   :  { %v1756_v62 = vmax.f32 %v1707_v60, 0.0 }
  0x9d   :  { %v1104_v0 = vpop.f32.mrf.mxu2  ;;  %v1534_v1 = vpop.f32.mrf.mxu3 }
  0x9e   :  { %v2646_v2 = vpack.c.bf16 %v1756_v62, %v1755_v61  ;;  %v295_v3 = vpop.f32.mrf.mxu0  ;;  %v676_v4 = vpop.f32.mrf.mxu1  ;;  %v1225_v5 = vmax.f32 %v795_v63, %v1104_v0  ;;  %v2607_v62 = vld [vmem:[%s3349_s0 + $0x1e8] sm:$0xff] }
  0x9f   :  { %v796_v7 = vmax.f32 %v295_v3, %v676_v4  ;;  %v2631_v63 = vld [vmem:[%s3349_s0 + $0x2ac] sm:$0xff] }
  0xa0   :  { %2647 = vst [vmem:[%s3351_s3] sm:$0xff] %v2646_v2   ;;  %v1655_v6 = vmax.f32 %v1225_v5, %v1534_v1 }
  0xa2   :  { %v1708_v17 = vadd.f32 %v2961_v47, %v1655_v6 }
  0xa4   :  { %v1757_v20 = vmax.f32 %v1708_v17, 0.0  ;;  %v2584_v17 = vld [vmem:[%s3349_s0 + $0x12c] sm:$0xff] }
  0xa5   :  { %v1106_v8 = vpop.f32.mrf.mxu2  ;;  %v1536_v9 = vpop.f32.mrf.mxu3 }
  0xa6   :  { %v1226_v12 = vmax.f32 %v796_v7, %v1106_v8  ;;  %v298_v13 = vpop.f32.mrf.mxu0  ;;  %v679_v14 = vpop.f32.mrf.mxu1 }
  0xa7   :  { %v797_v22 = vmax.f32 %v298_v13, %v679_v14 }
  0xa8   :  { %v1656_v18 = vmax.f32 %v1226_v12, %v1536_v9 }
  0xa9   :  { %2020 = vmatmul.msk.bf16.gmra.mxu0 %vm203_vm0, %v2557_v10  ;;  %2190 = vmatmul.msk.bf16.gmra.mxu1 %vm203_vm0, %v2581_v11 }
  0xaa   :  { %v1709_v19 = vadd.f32 %v2961_v47, %v1656_v18  ;;  %2360 = vmatmul.msk.bf16.gmra.mxu2 %vm203_vm0, %v2605_v15  ;;  %2530 = vmatmul.msk.bf16.gmra.mxu3 %vm203_vm0, %v2629_v16  ;;  %v2560_v16 = vld [vmem:[%s3349_s0 + $0x68] sm:$0xff] }
  0xac   :  { %v1758_v21 = vmax.f32 %v1709_v19, 0.0 }
  0xad   :  { %v1109_v23 = vpop.f32.mrf.mxu2  ;;  %v1539_v24 = vpop.f32.mrf.mxu3 }
  0xae   :  { %v2651_v25 = vpack.c.bf16 %v1758_v21, %v1757_v20  ;;  %v300_v26 = vpop.f32.mrf.mxu0  ;;  %v681_v27 = vpop.f32.mrf.mxu1  ;;  %v1227_v28 = vmax.f32 %v797_v22, %v1109_v23  ;;  %v2608_v21 = vld [vmem:[%s3349_s0 + $0x1f0] sm:$0xff] }
  0xaf   :  { %v798_v30 = vmax.f32 %v300_v26, %v681_v27  ;;  %v2632_v22 = vld [vmem:[%s3349_s0 + $0x2b4] sm:$0xff] }
  0xb0   :  { %2763 = vst [vmem:[%s3351_s3 + $0x8] sm:$0xff] %v2651_v25   ;;  %v1657_v29 = vmax.f32 %v1227_v28, %v1539_v24 }
  0xb2   :  { %v1710_v40 = vadd.f32 %v2961_v47, %v1657_v29 }
  0xb4   :  { %v1759_v43 = vmax.f32 %v1710_v40, 0.0  ;;  %v2585_v40 = vld [vmem:[%s3349_s0 + $0x134] sm:$0xff] }
  0xb5   :  { %v1111_v31 = vpop.f32.mrf.mxu2  ;;  %v1541_v32 = vpop.f32.mrf.mxu3 }
  0xb6   :  { %v1228_v35 = vmax.f32 %v798_v30, %v1111_v31  ;;  %v303_v36 = vpop.f32.mrf.mxu0  ;;  %v684_v37 = vpop.f32.mrf.mxu1 }
  0xb7   :  { %v799_v45 = vmax.f32 %v303_v36, %v684_v37 }
  0xb8   :  { %v1658_v41 = vmax.f32 %v1228_v35, %v1541_v32 }
  0xb9   :  { %2021 = vmatmul.msk.bf16.gmra.mxu0 %vm203_vm0, %v2558_v33  ;;  %2191 = vmatmul.msk.bf16.gmra.mxu1 %vm203_vm0, %v2582_v34 }
  0xba   :  { %v1711_v42 = vadd.f32 %v2961_v47, %v1658_v41  ;;  %2361 = vmatmul.msk.bf16.gmra.mxu2 %vm203_vm0, %v2606_v38  ;;  %2531 = vmatmul.msk.bf16.gmra.mxu3 %vm203_vm0, %v2630_v39  ;;  %v2561_v39 = vld [vmem:[%s3349_s0 + $0x70] sm:$0xff] }
  0xbc   :  { %v1760_v44 = vmax.f32 %v1711_v42, 0.0 }
  0xbd   :  { %v1114_v46 = vpop.f32.mrf.mxu2  ;;  %v1544_v48 = vpop.f32.mrf.mxu3 }
  0xbe   :  { %v2656_v49 = vpack.c.bf16 %v1760_v44, %v1759_v43  ;;  %v305_v50 = vpop.f32.mrf.mxu0  ;;  %v686_v51 = vpop.f32.mrf.mxu1  ;;  %v1229_v52 = vmax.f32 %v799_v45, %v1114_v46  ;;  %v2609_v44 = vld [vmem:[%s3349_s0 + $0x1f8] sm:$0xff] }
  0xbf   :  { %v800_v54 = vmax.f32 %v305_v50, %v686_v51  ;;  %v2633_v45 = vld [vmem:[%s3349_s0 + $0x2bc] sm:$0xff] }
  0xc0   :  { %2764 = vst [vmem:[%s3351_s3 + $0x10] sm:$0xff] %v2656_v49   ;;  %v1659_v53 = vmax.f32 %v1229_v52, %v1544_v48 }
  0xc2   :  { %v1712_v0 = vadd.f32 %v2961_v47, %v1659_v53 }
  0xc4   :  { %v1761_v3 = vmax.f32 %v1712_v0, 0.0  ;;  %v2586_v0 = vld [vmem:[%s3349_s0 + $0x13c] sm:$0xff] }
  0xc5   :  { %v1116_v55 = vpop.f32.mrf.mxu2  ;;  %v1546_v56 = vpop.f32.mrf.mxu3 }
  0xc6   :  { %v1230_v59 = vmax.f32 %v800_v54, %v1116_v55  ;;  %v308_v60 = vpop.f32.mrf.mxu0  ;;  %v689_v61 = vpop.f32.mrf.mxu1 }
  0xc7   :  { %v801_v5 = vmax.f32 %v308_v60, %v689_v61 }
  0xc8   :  { %v1660_v1 = vmax.f32 %v1230_v59, %v1546_v56 }
  0xc9   :  { %2022 = vmatmul.msk.bf16.gmra.mxu0 %vm203_vm0, %v2559_v57  ;;  %2192 = vmatmul.msk.bf16.gmra.mxu1 %vm203_vm0, %v2583_v58 }
  0xca   :  { %v1713_v2 = vadd.f32 %v2961_v47, %v1660_v1  ;;  %2362 = vmatmul.msk.bf16.gmra.mxu2 %vm203_vm0, %v2607_v62  ;;  %2532 = vmatmul.msk.bf16.gmra.mxu3 %vm203_vm0, %v2631_v63  ;;  %v2562_v63 = vld [vmem:[%s3349_s0 + $0x78] sm:$0xff] }
  0xcc   :  { %v1762_v4 = vmax.f32 %v1713_v2, 0.0 }
  0xcd   :  { %v1119_v6 = vpop.f32.mrf.mxu2  ;;  %v1549_v7 = vpop.f32.mrf.mxu3 }
  0xce   :  { %v2661_v8 = vpack.c.bf16 %v1762_v4, %v1761_v3  ;;  %v310_v9 = vpop.f32.mrf.mxu0  ;;  %v691_v10 = vpop.f32.mrf.mxu1  ;;  %v1231_v11 = vmax.f32 %v801_v5, %v1119_v6  ;;  %v2610_v4 = vld [vmem:[%s3349_s0 + $0x200] sm:$0xff] }
  0xcf   :  { %v802_v13 = vmax.f32 %v310_v9, %v691_v10  ;;  %v2634_v5 = vld [vmem:[%s3349_s0 + $0x2c4] sm:$0xff] }
  0xd0   :  { %2765 = vst [vmem:[%s3351_s3 + $0x18] sm:$0xff] %v2661_v8   ;;  %v1661_v12 = vmax.f32 %v1231_v11, %v1549_v7 }
  0xd2   :  { %v1714_v23 = vadd.f32 %v2961_v47, %v1661_v12 }
  0xd4   :  { %v1763_v26 = vmax.f32 %v1714_v23, 0.0  ;;  %v2587_v23 = vld [vmem:[%s3349_s0 + $0x144] sm:$0xff] }
  0xd5   :  { %v1121_v14 = vpop.f32.mrf.mxu2  ;;  %v1551_v15 = vpop.f32.mrf.mxu3 }
  0xd6   :  { %v1232_v18 = vmax.f32 %v802_v13, %v1121_v14  ;;  %v313_v19 = vpop.f32.mrf.mxu0  ;;  %v694_v20 = vpop.f32.mrf.mxu1 }
  0xd7   :  { %v803_v28 = vmax.f32 %v313_v19, %v694_v20 }
  0xd8   :  { %v1662_v24 = vmax.f32 %v1232_v18, %v1551_v15 }
  0xd9   :  { %2023 = vmatmul.msk.bf16.gmra.mxu0 %vm203_vm0, %v2560_v16  ;;  %2193 = vmatmul.msk.bf16.gmra.mxu1 %vm203_vm0, %v2584_v17 }
  0xda   :  { %v1715_v25 = vadd.f32 %v2961_v47, %v1662_v24  ;;  %2363 = vmatmul.msk.bf16.gmra.mxu2 %vm203_vm0, %v2608_v21  ;;  %2533 = vmatmul.msk.bf16.gmra.mxu3 %vm203_vm0, %v2632_v22  ;;  %v2563_v22 = vld [vmem:[%s3349_s0 + $0x80] sm:$0xff] }
  0xdc   :  { %v1764_v27 = vmax.f32 %v1715_v25, 0.0 }
  0xdd   :  { %v1124_v29 = vpop.f32.mrf.mxu2  ;;  %v1554_v30 = vpop.f32.mrf.mxu3 }
  0xde   :  { %v2666_v31 = vpack.c.bf16 %v1764_v27, %v1763_v26  ;;  %v315_v32 = vpop.f32.mrf.mxu0  ;;  %v696_v33 = vpop.f32.mrf.mxu1  ;;  %v1233_v34 = vmax.f32 %v803_v28, %v1124_v29  ;;  %v2611_v27 = vld [vmem:[%s3349_s0 + $0x208] sm:$0xff] }
  0xdf   :  { %v804_v36 = vmax.f32 %v315_v32, %v696_v33  ;;  %v2635_v28 = vld [vmem:[%s3349_s0 + $0x2cc] sm:$0xff] }
  0xe0   :  { %2766 = vst [vmem:[%s3351_s3 + $0x20] sm:$0xff] %v2666_v31   ;;  %v1663_v35 = vmax.f32 %v1233_v34, %v1554_v30 }
  0xe2   :  { %v1716_v46 = vadd.f32 %v2961_v47, %v1663_v35 }
  0xe4   :  { %v1765_v50 = vmax.f32 %v1716_v46, 0.0  ;;  %v2588_v46 = vld [vmem:[%s3349_s0 + $0x14c] sm:$0xff] }
  0xe5   :  { %v1126_v37 = vpop.f32.mrf.mxu2  ;;  %v1556_v38 = vpop.f32.mrf.mxu3 }
  0xe6   :  { %v1234_v41 = vmax.f32 %v804_v36, %v1126_v37  ;;  %v318_v42 = vpop.f32.mrf.mxu0  ;;  %v699_v43 = vpop.f32.mrf.mxu1 }
  0xe7   :  { %v805_v52 = vmax.f32 %v318_v42, %v699_v43 }
  0xe8   :  { %v1664_v48 = vmax.f32 %v1234_v41, %v1556_v38 }
  0xe9   :  { %2024 = vmatmul.msk.bf16.gmra.mxu0 %vm203_vm0, %v2561_v39  ;;  %2194 = vmatmul.msk.bf16.gmra.mxu1 %vm203_vm0, %v2585_v40 }
  0xea   :  { %v1717_v49 = vadd.f32 %v2961_v47, %v1664_v48  ;;  %2364 = vmatmul.msk.bf16.gmra.mxu2 %vm203_vm0, %v2609_v44  ;;  %2534 = vmatmul.msk.bf16.gmra.mxu3 %vm203_vm0, %v2633_v45  ;;  %v2564_v45 = vld [vmem:[%s3349_s0 + $0x88] sm:$0xff] }
  0xec   :  { %v1766_v51 = vmax.f32 %v1717_v49, 0.0 }
  0xed   :  { %v1129_v53 = vpop.f32.mrf.mxu2  ;;  %v1559_v54 = vpop.f32.mrf.mxu3 }
  0xee   :  { %v2671_v55 = vpack.c.bf16 %v1766_v51, %v1765_v50  ;;  %v320_v56 = vpop.f32.mrf.mxu0  ;;  %v701_v57 = vpop.f32.mrf.mxu1  ;;  %v1235_v58 = vmax.f32 %v805_v52, %v1129_v53  ;;  %v2612_v51 = vld [vmem:[%s3349_s0 + $0x210] sm:$0xff] }
  0xef   :  { %v806_v60 = vmax.f32 %v320_v56, %v701_v57  ;;  %v2636_v52 = vld [vmem:[%s3349_s0 + $0x2d4] sm:$0xff] }
  0xf0   :  { %2767 = vst [vmem:[%s3351_s3 + $0x28] sm:$0xff] %v2671_v55   ;;  %v1665_v59 = vmax.f32 %v1235_v58, %v1559_v54 }
  0xf2   :  { %v1718_v6 = vadd.f32 %v2961_v47, %v1665_v59 }
  0xf4   :  { %v1767_v9 = vmax.f32 %v1718_v6, 0.0  ;;  %v2589_v6 = vld [vmem:[%s3349_s0 + $0x154] sm:$0xff] }
  0xf5   :  { %v1131_v61 = vpop.f32.mrf.mxu2  ;;  %v1561_v62 = vpop.f32.mrf.mxu3 }
  0xf6   :  { %v1236_v1 = vmax.f32 %v806_v60, %v1131_v61  ;;  %v323_v2 = vpop.f32.mrf.mxu0  ;;  %v704_v3 = vpop.f32.mrf.mxu1 }
  0xf7   :  { %v807_v11 = vmax.f32 %v323_v2, %v704_v3 }
  0xf8   :  { %v1666_v7 = vmax.f32 %v1236_v1, %v1561_v62 }
  0xf9   :  { %2025 = vmatmul.msk.bf16.gmra.mxu0 %vm203_vm0, %v2562_v63  ;;  %2195 = vmatmul.msk.bf16.gmra.mxu1 %vm203_vm0, %v2586_v0 }
  0xfa   :  { %v1719_v8 = vadd.f32 %v2961_v47, %v1666_v7  ;;  %2365 = vmatmul.msk.bf16.gmra.mxu2 %vm203_vm0, %v2610_v4  ;;  %2535 = vmatmul.msk.bf16.gmra.mxu3 %vm203_vm0, %v2634_v5  ;;  %v2565_v5 = vld [vmem:[%s3349_s0 + $0x90] sm:$0xff] }
  0xfc   :  { %v1768_v10 = vmax.f32 %v1719_v8, 0.0 }
  0xfd   :  { %v1134_v12 = vpop.f32.mrf.mxu2  ;;  %v1564_v13 = vpop.f32.mrf.mxu3 }
  0xfe   :  { %v2676_v14 = vpack.c.bf16 %v1768_v10, %v1767_v9  ;;  %v325_v15 = vpop.f32.mrf.mxu0  ;;  %v706_v16 = vpop.f32.mrf.mxu1  ;;  %v1237_v17 = vmax.f32 %v807_v11, %v1134_v12  ;;  %v2613_v10 = vld [vmem:[%s3349_s0 + $0x218] sm:$0xff] }
  0xff   :  { %v808_v19 = vmax.f32 %v325_v15, %v706_v16  ;;  %v2637_v11 = vld [vmem:[%s3349_s0 + $0x2dc] sm:$0xff] }
 0x100   :  { %2768 = vst [vmem:[%s3351_s3 + $0x30] sm:$0xff] %v2676_v14   ;;  %v1667_v18 = vmax.f32 %v1237_v17, %v1564_v13 }
 0x102   :  { %v1720_v29 = vadd.f32 %v2961_v47, %v1667_v18 }
 0x104   :  { %v1769_v32 = vmax.f32 %v1720_v29, 0.0  ;;  %v2590_v29 = vld [vmem:[%s3349_s0 + $0x15c] sm:$0xff] }
 0x105   :  { %v1136_v20 = vpop.f32.mrf.mxu2  ;;  %v1566_v21 = vpop.f32.mrf.mxu3 }
 0x106   :  { %v1238_v24 = vmax.f32 %v808_v19, %v1136_v20  ;;  %v328_v25 = vpop.f32.mrf.mxu0  ;;  %v709_v26 = vpop.f32.mrf.mxu1 }
 0x107   :  { %v809_v34 = vmax.f32 %v328_v25, %v709_v26 }
 0x108   :  { %v1668_v30 = vmax.f32 %v1238_v24, %v1566_v21 }
 0x109   :  { %2026 = vmatmul.msk.bf16.gmra.mxu0 %vm203_vm0, %v2563_v22  ;;  %2196 = vmatmul.msk.bf16.gmra.mxu1 %vm203_vm0, %v2587_v23 }
 0x10a   :  { %v1721_v31 = vadd.f32 %v2961_v47, %v1668_v30  ;;  %2366 = vmatmul.msk.bf16.gmra.mxu2 %vm203_vm0, %v2611_v27  ;;  %2536 = vmatmul.msk.bf16.gmra.mxu3 %vm203_vm0, %v2635_v28  ;;  %v2566_v28 = vld [vmem:[%s3349_s0 + $0x98] sm:$0xff] }
 0x10c   :  { %v1770_v33 = vmax.f32 %v1721_v31, 0.0 }
 0x10d   :  { %v1139_v35 = vpop.f32.mrf.mxu2  ;;  %v1569_v36 = vpop.f32.mrf.mxu3 }
 0x10e   :  { %v2681_v37 = vpack.c.bf16 %v1770_v33, %v1769_v32  ;;  %v330_v38 = vpop.f32.mrf.mxu0  ;;  %v711_v39 = vpop.f32.mrf.mxu1  ;;  %v1239_v40 = vmax.f32 %v809_v34, %v1139_v35  ;;  %v2614_v33 = vld [vmem:[%s3349_s0 + $0x220] sm:$0xff] }
 0x10f   :  { %v810_v42 = vmax.f32 %v330_v38, %v711_v39  ;;  %v2638_v34 = vld [vmem:[%s3349_s0 + $0x2e4] sm:$0xff] }
 0x110   :  { %2769 = vst [vmem:[%s3351_s3 + $0x38] sm:$0xff] %v2681_v37   ;;  %v1669_v41 = vmax.f32 %v1239_v40, %v1569_v36 }
 0x112   :  { %v1722_v53 = vadd.f32 %v2961_v47, %v1669_v41 }
 0x114   :  { %v1771_v56 = vmax.f32 %v1722_v53, 0.0  ;;  %v2591_v53 = vld [vmem:[%s3349_s0 + $0x164] sm:$0xff] }
 0x115   :  { %v1141_v43 = vpop.f32.mrf.mxu2  ;;  %v1571_v44 = vpop.f32.mrf.mxu3 }
 0x116   :  { %v1240_v48 = vmax.f32 %v810_v42, %v1141_v43  ;;  %v333_v49 = vpop.f32.mrf.mxu0  ;;  %v714_v50 = vpop.f32.mrf.mxu1 }
 0x117   :  { %v811_v58 = vmax.f32 %v333_v49, %v714_v50 }
 0x118   :  { %v1670_v54 = vmax.f32 %v1240_v48, %v1571_v44 }
 0x119   :  { %2027 = vmatmul.msk.bf16.gmra.mxu0 %vm203_vm0, %v2564_v45  ;;  %2197 = vmatmul.msk.bf16.gmra.mxu1 %vm203_vm0, %v2588_v46 }
 0x11a   :  { %v1723_v55 = vadd.f32 %v2961_v47, %v1670_v54  ;;  %2367 = vmatmul.msk.bf16.gmra.mxu2 %vm203_vm0, %v2612_v51  ;;  %2537 = vmatmul.msk.bf16.gmra.mxu3 %vm203_vm0, %v2636_v52  ;;  %v2567_v52 = vld [vmem:[%s3349_s0 + $0xa0] sm:$0xff] }
 0x11c   :  { %v1772_v57 = vmax.f32 %v1723_v55, 0.0 }
 0x11d   :  { %v1144_v59 = vpop.f32.mrf.mxu2  ;;  %v1574_v60 = vpop.f32.mrf.mxu3 }
 0x11e   :  { %v2686_v61 = vpack.c.bf16 %v1772_v57, %v1771_v56  ;;  %v335_v62 = vpop.f32.mrf.mxu0  ;;  %v716_v63 = vpop.f32.mrf.mxu1  ;;  %v1241_v0 = vmax.f32 %v811_v58, %v1144_v59  ;;  %v2615_v57 = vld [vmem:[%s3349_s0 + $0x228] sm:$0xff] }
 0x11f   :  { %v812_v2 = vmax.f32 %v335_v62, %v716_v63  ;;  %v2639_v58 = vld [vmem:[%s3349_s0 + $0x2ec] sm:$0xff] }
 0x120   :  { %2770 = vst [vmem:[%s3351_s3 + $0x40] sm:$0xff] %v2686_v61   ;;  %v1671_v1 = vmax.f32 %v1241_v0, %v1574_v60 }
 0x122   :  { %v1724_v12 = vadd.f32 %v2961_v47, %v1671_v1 }
 0x124   :  { %v1773_v15 = vmax.f32 %v1724_v12, 0.0  ;;  %v2592_v12 = vld [vmem:[%s3349_s0 + $0x16c] sm:$0xff] }
 0x125   :  { %v1146_v3 = vpop.f32.mrf.mxu2  ;;  %v1576_v4 = vpop.f32.mrf.mxu3 }
 0x126   :  { %v1242_v7 = vmax.f32 %v812_v2, %v1146_v3  ;;  %v338_v8 = vpop.f32.mrf.mxu0  ;;  %v719_v9 = vpop.f32.mrf.mxu1 }
 0x127   :  { %v813_v17 = vmax.f32 %v338_v8, %v719_v9 }
 0x128   :  { %v1672_v13 = vmax.f32 %v1242_v7, %v1576_v4 }
 0x129   :  { %2028 = vmatmul.msk.bf16.gmra.mxu0 %vm203_vm0, %v2565_v5  ;;  %2198 = vmatmul.msk.bf16.gmra.mxu1 %vm203_vm0, %v2589_v6 }
 0x12a   :  { %v1725_v14 = vadd.f32 %v2961_v47, %v1672_v13  ;;  %2368 = vmatmul.msk.bf16.gmra.mxu2 %vm203_vm0, %v2613_v10  ;;  %2538 = vmatmul.msk.bf16.gmra.mxu3 %vm203_vm0, %v2637_v11  ;;  %v2568_v11 = vld [vmem:[%s3349_s0 + $0xa8] sm:$0xff] }
 0x12c   :  { %v1774_v16 = vmax.f32 %v1725_v14, 0.0 }
 0x12d   :  { %v1149_v18 = vpop.f32.mrf.mxu2  ;;  %v1579_v19 = vpop.f32.mrf.mxu3 }
 0x12e   :  { %v2691_v20 = vpack.c.bf16 %v1774_v16, %v1773_v15  ;;  %v340_v21 = vpop.f32.mrf.mxu0  ;;  %v721_v22 = vpop.f32.mrf.mxu1  ;;  %v1243_v23 = vmax.f32 %v813_v17, %v1149_v18  ;;  %v2616_v16 = vld [vmem:[%s3349_s0 + $0x230] sm:$0xff] }
 0x12f   :  { %v814_v25 = vmax.f32 %v340_v21, %v721_v22  ;;  %v2640_v17 = vld [vmem:[%s3349_s0 + $0x2f4] sm:$0xff] }
 0x130   :  { %2771 = vst [vmem:[%s3351_s3 + $0x48] sm:$0xff] %v2691_v20   ;;  %v1673_v24 = vmax.f32 %v1243_v23, %v1579_v19 }
 0x132   :  { %v1726_v35 = vadd.f32 %v2961_v47, %v1673_v24 }
 0x134   :  { %v1775_v38 = vmax.f32 %v1726_v35, 0.0  ;;  %v2593_v35 = vld [vmem:[%s3349_s0 + $0x174] sm:$0xff] }
 0x135   :  { %v1151_v26 = vpop.f32.mrf.mxu2  ;;  %v1581_v27 = vpop.f32.mrf.mxu3 }
 0x136   :  { %v1244_v30 = vmax.f32 %v814_v25, %v1151_v26  ;;  %v343_v31 = vpop.f32.mrf.mxu0  ;;  %v724_v32 = vpop.f32.mrf.mxu1 }
 0x137   :  { %v815_v40 = vmax.f32 %v343_v31, %v724_v32 }
 0x138   :  { %v1674_v36 = vmax.f32 %v1244_v30, %v1581_v27 }
 0x139   :  { %2029 = vmatmul.msk.bf16.gmra.mxu0 %vm203_vm0, %v2566_v28  ;;  %2199 = vmatmul.msk.bf16.gmra.mxu1 %vm203_vm0, %v2590_v29 }
 0x13a   :  { %v1727_v37 = vadd.f32 %v2961_v47, %v1674_v36  ;;  %2369 = vmatmul.msk.bf16.gmra.mxu2 %vm203_vm0, %v2614_v33  ;;  %2539 = vmatmul.msk.bf16.gmra.mxu3 %vm203_vm0, %v2638_v34  ;;  %v2569_v34 = vld [vmem:[%s3349_s0 + $0xb0] sm:$0xff] }
 0x13c   :  { %v1776_v39 = vmax.f32 %v1727_v37, 0.0 }
 0x13d   :  { %v1154_v41 = vpop.f32.mrf.mxu2  ;;  %v1584_v42 = vpop.f32.mrf.mxu3 }
 0x13e   :  { %v2696_v43 = vpack.c.bf16 %v1776_v39, %v1775_v38  ;;  %v345_v44 = vpop.f32.mrf.mxu0  ;;  %v726_v45 = vpop.f32.mrf.mxu1  ;;  %v1245_v46 = vmax.f32 %v815_v40, %v1154_v41  ;;  %v2617_v39 = vld [vmem:[%s3349_s0 + $0x238] sm:$0xff] }
 0x13f   :  { %v816_v49 = vmax.f32 %v345_v44, %v726_v45  ;;  %v2641_v40 = vld [vmem:[%s3349_s0 + $0x2fc] sm:$0xff] }
 0x140   :  { %2772 = vst [vmem:[%s3351_s3 + $0x50] sm:$0xff] %v2696_v43   ;;  %v1675_v48 = vmax.f32 %v1245_v46, %v1584_v42 }
 0x142   :  { %v1728_v59 = vadd.f32 %v2961_v47, %v1675_v48 }
 0x144   :  { %v1777_v62 = vmax.f32 %v1728_v59, 0.0  ;;  %v2594_v59 = vld [vmem:[%s3349_s0 + $0x17c] sm:$0xff] }
 0x145   :  { %v1156_v50 = vpop.f32.mrf.mxu2  ;;  %v1586_v51 = vpop.f32.mrf.mxu3 }
 0x146   :  { %v1246_v54 = vmax.f32 %v816_v49, %v1156_v50  ;;  %v348_v55 = vpop.f32.mrf.mxu0  ;;  %v729_v56 = vpop.f32.mrf.mxu1 }
 0x147   :  { %v817_v0 = vmax.f32 %v348_v55, %v729_v56 }
 0x148   :  { %v1676_v60 = vmax.f32 %v1246_v54, %v1586_v51 }
 0x149   :  { %2030 = vmatmul.msk.bf16.gmra.mxu0 %vm203_vm0, %v2567_v52  ;;  %2200 = vmatmul.msk.bf16.gmra.mxu1 %vm203_vm0, %v2591_v53 }
 0x14a   :  { %v1729_v61 = vadd.f32 %v2961_v47, %v1676_v60  ;;  %2370 = vmatmul.msk.bf16.gmra.mxu2 %vm203_vm0, %v2615_v57  ;;  %2540 = vmatmul.msk.bf16.gmra.mxu3 %vm203_vm0, %v2639_v58  ;;  %v2570_v58 = vld [vmem:[%s3349_s0 + $0xb8] sm:$0xff] }
 0x14c   :  { %v1778_v63 = vmax.f32 %v1729_v61, 0.0 }
 0x14d   :  { %v1159_v1 = vpop.f32.mrf.mxu2  ;;  %v1589_v2 = vpop.f32.mrf.mxu3 }
 0x14e   :  { %v2701_v3 = vpack.c.bf16 %v1778_v63, %v1777_v62  ;;  %v350_v4 = vpop.f32.mrf.mxu0  ;;  %v731_v5 = vpop.f32.mrf.mxu1  ;;  %v1247_v6 = vmax.f32 %v817_v0, %v1159_v1  ;;  %v2618_v63 = vld [vmem:[%s3349_s0 + $0x240] sm:$0xff] }
 0x14f   :  { %v818_v8 = vmax.f32 %v350_v4, %v731_v5  ;;  %v2642_v0 = vld [vmem:[%s3349_s0 + $0x304] sm:$0xff] }
 0x150   :  { %2773 = vst [vmem:[%s3351_s3 + $0x58] sm:$0xff] %v2701_v3   ;;  %v1677_v7 = vmax.f32 %v1247_v6, %v1589_v2 }
 0x152   :  { %v1730_v18 = vadd.f32 %v2961_v47, %v1677_v7 }
 0x154   :  { %v1779_v21 = vmax.f32 %v1730_v18, 0.0 }
 0x155   :  { %v1161_v9 = vpop.f32.mrf.mxu2  ;;  %v1591_v10 = vpop.f32.mrf.mxu3 }
 0x156   :  { %v1248_v13 = vmax.f32 %v818_v8, %v1161_v9  ;;  %v353_v14 = vpop.f32.mrf.mxu0  ;;  %v734_v15 = vpop.f32.mrf.mxu1 }
 0x157   :  { %v819_v23 = vmax.f32 %v353_v14, %v734_v15  ;;  %v2253_v14 = vld [vmem:[%s3349_s0 + $0x248] sm:$0xf]  ;;  %v2423_v15 = vld [vmem:[%s3349_s0 + $0x30c] sm:$0xf] }
 0x158   :  { %v1678_v19 = vmax.f32 %v1248_v13, %v1591_v10  ;;  %v2083_v13 = vld [vmem:[%s3349_s0 + $0x184] sm:$0xf] }
 0x159   :  { %2031 = vmatmul.msk.bf16.gmra.mxu0 %vm203_vm0, %v2568_v11  ;;  %2201 = vmatmul.msk.bf16.gmra.mxu1 %vm203_vm0, %v2592_v12  ;;  %v67_v12 = vld [vmem:[%s3349_s0 + $0xc0] sm:$0xf]  ;;  %v559_v18 = vunpack.c.l.b16 %v2083_v13 }
 0x15a   :  { %v1731_v20 = vadd.f32 %v2961_v47, %v1678_v19  ;;  %2371 = vmatmul.msk.bf16.gmra.mxu2 %vm203_vm0, %v2616_v16  ;;  %2541 = vmatmul.msk.bf16.gmra.mxu3 %vm203_vm0, %v2640_v17  ;;  %v165_v17 = vunpack.c.l.b16 %v67_v12  ;;  %v989_v19 = vunpack.c.l.b16 %v2253_v14 }
 0x15c   :  { %v1780_v22 = vmax.f32 %v1731_v20, 0.0  ;;  %v1419_v20 = vunpack.c.l.b16 %v2423_v15 }
 0x15d   :  { %v1164_v24 = vpop.f32.mrf.mxu2  ;;  %v1594_v25 = vpop.f32.mrf.mxu3 }
 0x15e   :  { %v2706_v26 = vpack.c.bf16 %v1780_v22, %v1779_v21  ;;  %v355_v27 = vpop.f32.mrf.mxu0  ;;  %v736_v28 = vpop.f32.mrf.mxu1  ;;  %v1249_v29 = vmax.f32 %v819_v23, %v1164_v24 }
 0x15f   :  { %v820_v31 = vmax.f32 %v355_v27, %v736_v28 }
 0x160   :  { %2774 = vst [vmem:[%s3351_s3 + $0x60] sm:$0xff] %v2706_v26   ;;  %v1679_v30 = vmax.f32 %v1249_v29, %v1594_v25  ;;  %v190_v25 = vpack.c.b16 %v165_v17, %v165_v17  ;;  %v584_v26 = vpack.c.b16 %v559_v18, %v559_v18 }
 0x162   :  { %v1732_v41 = vadd.f32 %v2961_v47, %v1679_v30  ;;  %v1014_v30 = vpack.c.b16 %v989_v19, %v989_v19 }
 0x164   :  { %v1781_v44 = vmax.f32 %v1732_v41, 0.0 }
 0x165   :  { %v1166_v32 = vpop.f32.mrf.mxu2  ;;  %v1596_v33 = vpop.f32.mrf.mxu3 }
 0x166   :  { %v1250_v36 = vmax.f32 %v820_v31, %v1166_v32  ;;  %v358_v37 = vpop.f32.mrf.mxu0  ;;  %v739_v38 = vpop.f32.mrf.mxu1  ;;  %v1444_v31 = vpack.c.b16 %v1419_v20, %v1419_v20 }
 0x167   :  { %v821_v46 = vmax.f32 %v358_v37, %v739_v38 }
 0x168   :  { %v1680_v42 = vmax.f32 %v1250_v36, %v1596_v33 }
 0x169   :  { %2032 = vmatmul.msk.bf16.gmra.mxu0 %vm203_vm0, %v2569_v34  ;;  %2202 = vmatmul.msk.bf16.gmra.mxu1 %vm203_vm0, %v2593_v35 }
 0x16a   :  { %v1733_v43 = vadd.f32 %v2961_v47, %v1680_v42  ;;  %2372 = vmatmul.msk.bf16.gmra.mxu2 %vm203_vm0, %v2617_v39  ;;  %2542 = vmatmul.msk.bf16.gmra.mxu3 %vm203_vm0, %v2641_v40 }
 0x16c   :  { %v1782_v45 = vmax.f32 %v1733_v43, 0.0 }
 0x16d   :  { %v1169_v48 = vpop.f32.mrf.mxu2  ;;  %v1599_v49 = vpop.f32.mrf.mxu3 }
 0x16e   :  { %v2711_v50 = vpack.c.bf16 %v1782_v45, %v1781_v44  ;;  %v360_v51 = vpop.f32.mrf.mxu0  ;;  %v741_v52 = vpop.f32.mrf.mxu1  ;;  %v1251_v53 = vmax.f32 %v821_v46, %v1169_v48 }
 0x16f   :  { %v822_v55 = vmax.f32 %v360_v51, %v741_v52 }
 0x170   :  { %2775 = vst [vmem:[%s3351_s3 + $0x68] sm:$0xff] %v2711_v50   ;;  %v1681_v54 = vmax.f32 %v1251_v53, %v1599_v49 }
 0x172   :  { %v1734_v1 = vadd.f32 %v2961_v47, %v1681_v54 }
 0x174   :  { %v1783_v4 = vmax.f32 %v1734_v1, 0.0 }
 0x175   :  { %v1171_v56 = vpop.f32.mrf.mxu2  ;;  %v1601_v57 = vpop.f32.mrf.mxu3 }
 0x176   :  { %v1252_v60 = vmax.f32 %v822_v55, %v1171_v56  ;;  %v363_v61 = vpop.f32.mrf.mxu0  ;;  %v744_v62 = vpop.f32.mrf.mxu1 }
 0x177   :  { %v823_v6 = vmax.f32 %v363_v61, %v744_v62 }
 0x178   :  { %v1682_v2 = vmax.f32 %v1252_v60, %v1601_v57 }
 0x179   :  { %2033 = vmatmul.msk.bf16.gmra.mxu0 %vm203_vm0, %v2570_v58  ;;  %2203 = vmatmul.msk.bf16.gmra.mxu1 %vm203_vm0, %v2594_v59 }
 0x17a   :  { %v1735_v3 = vadd.f32 %v2961_v47, %v1682_v2  ;;  %2373 = vmatmul.msk.bf16.gmra.mxu2 %vm203_vm0, %v2618_v63  ;;  %2543 = vmatmul.msk.bf16.gmra.mxu3 %vm203_vm0, %v2642_v0 }
 0x17c   :  { %v1784_v5 = vmax.f32 %v1735_v3, 0.0 }
 0x17d   :  { %v1174_v7 = vpop.f32.mrf.mxu2  ;;  %v1604_v8 = vpop.f32.mrf.mxu3 }
 0x17e   :  { %v2716_v9 = vpack.c.bf16 %v1784_v5, %v1783_v4  ;;  %v365_v10 = vpop.f32.mrf.mxu0  ;;  %v746_v11 = vpop.f32.mrf.mxu1  ;;  %v1253_v16 = vmax.f32 %v823_v6, %v1174_v7 }
 0x17f   :  { %v824_v22 = vmax.f32 %v365_v10, %v746_v11 }
 0x180   :  { %2776 = vst [vmem:[%s3351_s3 + $0x70] sm:$0xff] %v2716_v9   ;;  %v1683_v21 = vmax.f32 %v1253_v16, %v1604_v8 }
 0x182   :  { %v1736_v32 = vadd.f32 %v2961_v47, %v1683_v21 }
 0x184   :  { %v1785_v35 = vmax.f32 %v1736_v32, 0.0 }
 0x185   :  { %v1176_v23 = vpop.f32.mrf.mxu2  ;;  %v1606_v24 = vpop.f32.mrf.mxu3 }
 0x186   :  { %v1254_v27 = vmax.f32 %v824_v22, %v1176_v23  ;;  %v368_v28 = vpop.f32.mrf.mxu0  ;;  %v749_v29 = vpop.f32.mrf.mxu1 }
 0x187   :  { %v825_v37 = vmax.f32 %v368_v28, %v749_v29 }
 0x188   :  { %v1684_v33 = vmax.f32 %v1254_v27, %v1606_v24 }
 0x189   :  { %2034 = vmatmul.msk.bf16.gmra.mxu0 %vm203_vm0, %v190_v25  ;;  %2204 = vmatmul.msk.bf16.gmra.mxu1 %vm203_vm0, %v584_v26 }
 0x18a   :  { %v1737_v34 = vadd.f32 %v2961_v47, %v1684_v33  ;;  %2374 = vmatmul.msk.bf16.gmra.mxu2 %vm203_vm0, %v1014_v30  ;;  %2544 = vmatmul.msk.bf16.gmra.mxu3 %vm203_vm0, %v1444_v31 }
 0x18c   :  { %v1786_v36 = vmax.f32 %v1737_v34, 0.0 }
 0x18d   :  { %v1179_v38 = vpop.f32.mrf.mxu2  ;;  %v1609_v39 = vpop.f32.mrf.mxu3 }
 0x18e   :  { %v2721_v40 = vpack.c.bf16 %v1786_v36, %v1785_v35  ;;  %v370_v41 = vpop.f32.mrf.mxu0  ;;  %v751_v42 = vpop.f32.mrf.mxu1  ;;  %v1255_v43 = vmax.f32 %v825_v37, %v1179_v38 }
 0x18f   :  { %v826_v45 = vmax.f32 %v370_v41, %v751_v42 }
 0x190   :  { %2777 = vst [vmem:[%s3351_s3 + $0x78] sm:$0xff] %v2721_v40   ;;  %v1685_v44 = vmax.f32 %v1255_v43, %v1609_v39 }
 0x192   :  { %v1738_v52 = vadd.f32 %v2961_v47, %v1685_v44  ;;  %v3317_v44 = vld [vmem:[%s3350_s2] ss:$0 sm:$0xff] }
 0x194   :  { %v1787_v55 = vmax.f32 %v1738_v52, 0.0 }
 0x195   :  { %v1181_v46 = vpop.f32.mrf.mxu2  ;;  %v1611_v48 = vpop.f32.mrf.mxu3 }
 0x196   :  { %v1256_v49 = vmax.f32 %v826_v45, %v1181_v46  ;;  %v373_v50 = vpop.f32.mrf.mxu0  ;;  %v754_v51 = vpop.f32.mrf.mxu1 }
 0x197   :  { %v827_v57 = vmax.f32 %v373_v50, %v754_v51 }
 0x198   :  { %v1686_v53 = vmax.f32 %v1256_v49, %v1611_v48 }
 0x19a   :  { %v1739_v54 = vadd.f32 %v2961_v47, %v1686_v53 }
 0x19c   :  { %v1788_v56 = vmax.f32 %v1739_v54, 0.0 }
 0x19d   :  { %v1184_v58 = vpop.f32.mrf.mxu2  ;;  %v1614_v59 = vpop.f32.mrf.mxu3 }
 0x19e   :  { %v2726_v60 = vpack.c.bf16 %v1788_v56, %v1787_v55  ;;  %v375_v61 = vpop.f32.mrf.mxu0  ;;  %v756_v62 = vpop.f32.mrf.mxu1  ;;  %v1257_v63 = vmax.f32 %v827_v57, %v1184_v58 }
 0x19f   :  { %v828_v1 = vmax.f32 %v375_v61, %v756_v62 }
 0x1a0   :  { %2778 = vst [vmem:[%s3351_s3 + $0x80] sm:$0xff] %v2726_v60   ;;  %v1687_v0 = vmax.f32 %v1257_v63, %v1614_v59 }
 0x1a2   :  { %v1740_v7 = vadd.f32 %v2961_v47, %v1687_v0 }
 0x1a4   :  { %v1789_v10 = vmax.f32 %v1740_v7, 0.0 }
 0x1a5   :  { %v1186_v2 = vpop.f32.mrf.mxu2  ;;  %v1616_v3 = vpop.f32.mrf.mxu3 }
 0x1a6   :  { %v1258_v4 = vmax.f32 %v828_v1, %v1186_v2  ;;  %v378_v5 = vpop.f32.mrf.mxu0  ;;  %v759_v6 = vpop.f32.mrf.mxu1 }
 0x1a7   :  { %v829_v12 = vmax.f32 %v378_v5, %v759_v6 }
 0x1a8   :  { %v1688_v8 = vmax.f32 %v1258_v4, %v1616_v3 }
 0x1aa   :  { %v1741_v9 = vadd.f32 %v2961_v47, %v1688_v8 }
 0x1ac   :  { %v1790_v11 = vmax.f32 %v1741_v9, 0.0 }
 0x1ad   :  { %v1189_v13 = vpop.f32.mrf.mxu2  ;;  %v1619_v14 = vpop.f32.mrf.mxu3 }
 0x1ae   :  { %v2731_v15 = vpack.c.bf16 %v1790_v11, %v1789_v10  ;;  %v380_v16 = vpop.f32.mrf.mxu0  ;;  %v761_v17 = vpop.f32.mrf.mxu1  ;;  %v1259_v18 = vmax.f32 %v829_v12, %v1189_v13 }
 0x1af   :  { %v830_v20 = vmax.f32 %v380_v16, %v761_v17 }
 0x1b0   :  { %2779 = vst [vmem:[%s3351_s3 + $0x88] sm:$0xff] %v2731_v15   ;;  %v1689_v19 = vmax.f32 %v1259_v18, %v1619_v14 }
 0x1b2   :  { %v1742_v26 = vadd.f32 %v2961_v47, %v1689_v19 }
 0x1b4   :  { %v1791_v29 = vmax.f32 %v1742_v26, 0.0 }
 0x1b5   :  { %v1191_v21 = vpop.f32.mrf.mxu2  ;;  %v1621_v22 = vpop.f32.mrf.mxu3 }
 0x1b6   :  { %v1260_v23 = vmax.f32 %v830_v20, %v1191_v21  ;;  %v383_v24 = vpop.f32.mrf.mxu0  ;;  %v764_v25 = vpop.f32.mrf.mxu1 }
 0x1b7   :  { %v831_v31 = vmax.f32 %v383_v24, %v764_v25 }
 0x1b8   :  { %v1690_v27 = vmax.f32 %v1260_v23, %v1621_v22 }
 0x1ba   :  { %v1743_v28 = vadd.f32 %v2961_v47, %v1690_v27 }
 0x1bc   :  { %v1792_v30 = vmax.f32 %v1743_v28, 0.0 }
 0x1bd   :  { %v1194_v32 = vpop.f32.mrf.mxu2  ;;  %v1624_v33 = vpop.f32.mrf.mxu3 }
 0x1be   :  { %v2736_v34 = vpack.c.bf16 %v1792_v30, %v1791_v29  ;;  %v385_v35 = vpop.f32.mrf.mxu0  ;;  %v766_v36 = vpop.f32.mrf.mxu1  ;;  %v1261_v37 = vmax.f32 %v831_v31, %v1194_v32 }
 0x1bf   :  { %v832_v39 = vmax.f32 %v385_v35, %v766_v36 }
 0x1c0   :  { %2780 = vst [vmem:[%s3351_s3 + $0x90] sm:$0xff] %v2736_v34   ;;  %v1691_v38 = vmax.f32 %v1261_v37, %v1624_v33 }
 0x1c2   :  { %v1744_v45 = vadd.f32 %v3317_v44, %v1691_v38 }
 0x1c4   :  { %v1793_v49 = vmax.f32 %v1744_v45, 0.0 }
 0x1c5   :  { %v1196_v40 = vpop.f32.mrf.mxu2  ;;  %v1626_v41 = vpop.f32.mrf.mxu3 }
 0x1c6   :  { %v1262_v42 = vmax.f32 %v832_v39, %v1196_v40  ;;  %v388_v43 = vpop.f32.mrf.mxu0  ;;  %v769_v47 = vpop.f32.mrf.mxu1 }
 0x1c7   :  { %v833_v51 = vmax.f32 %v388_v43, %v769_v47 }
 0x1c8   :  { %v1692_v46 = vmax.f32 %v1262_v42, %v1626_v41 }
 0x1ca   :  { %v1745_v48 = vadd.f32 %v3317_v44, %v1692_v46 }
 0x1cc   :  { %v1794_v50 = vmax.f32 %v1745_v48, 0.0 }
 0x1cd   :  { %v1199_v52 = vpop.f32.mrf.mxu2  ;;  %v1629_v53 = vpop.f32.mrf.mxu3 }
 0x1ce   :  { %v2741_v54 = vpack.c.bf16 %v1794_v50, %v1793_v49  ;;  %v390_v55 = vpop.f32.mrf.mxu0  ;;  %v771_v56 = vpop.f32.mrf.mxu1  ;;  %v1263_v57 = vmax.f32 %v833_v51, %v1199_v52 }
 0x1cf   :  { %v834_v59 = vmax.f32 %v390_v55, %v771_v56 }
 0x1d0   :  { %2781 = vst [vmem:[%s3351_s3 + $0x98] sm:$0xff] %v2741_v54   ;;  %v1693_v58 = vmax.f32 %v1263_v57, %v1629_v53 }
 0x1d2   :  { %v1746_v1 = vadd.f32 %v3317_v44, %v1693_v58 }
 0x1d4   :  { %v1795_v4 = vmax.f32 %v1746_v1, 0.0 }
 0x1d5   :  { %v1201_v60 = vpop.f32.mrf.mxu2  ;;  %v1631_v61 = vpop.f32.mrf.mxu3 }
 0x1d6   :  { %v1264_v62 = vmax.f32 %v834_v59, %v1201_v60  ;;  %v393_v63 = vpop.f32.mrf.mxu0  ;;  %v774_v0 = vpop.f32.mrf.mxu1 }
 0x1d7   :  { %v835_v6 = vmax.f32 %v393_v63, %v774_v0 }
 0x1d8   :  { %v1694_v2 = vmax.f32 %v1264_v62, %v1631_v61 }
 0x1da   :  { %v1747_v3 = vadd.f32 %v3317_v44, %v1694_v2 }
 0x1dc   :  { %v1796_v5 = vmax.f32 %v1747_v3, 0.0 }
 0x1dd   :  { %v1204_v7 = vpop.f32.mrf.mxu2  ;;  %v1634_v8 = vpop.f32.mrf.mxu3 }
 0x1de   :  { %v2746_v9 = vpack.c.bf16 %v1796_v5, %v1795_v4  ;;  %v395_v10 = vpop.f32.mrf.mxu0  ;;  %v776_v11 = vpop.f32.mrf.mxu1  ;;  %v1265_v12 = vmax.f32 %v835_v6, %v1204_v7 }
 0x1df   :  { %v836_v14 = vmax.f32 %v395_v10, %v776_v11 }
 0x1e0   :  { %2782 = vst [vmem:[%s3351_s3 + $0xa0] sm:$0xff] %v2746_v9   ;;  %v1695_v13 = vmax.f32 %v1265_v12, %v1634_v8 }
 0x1e2   :  { %v1748_v20 = vadd.f32 %v3317_v44, %v1695_v13 }
 0x1e4   :  { %v1797_v23 = vmax.f32 %v1748_v20, 0.0 }
 0x1e5   :  { %v1206_v15 = vpop.f32.mrf.mxu2  ;;  %v1636_v16 = vpop.f32.mrf.mxu3 }
 0x1e6   :  { %v1266_v17 = vmax.f32 %v836_v14, %v1206_v15  ;;  %v398_v18 = vpop.f32.mrf.mxu0  ;;  %v779_v19 = vpop.f32.mrf.mxu1 }
 0x1e7   :  { %v837_v25 = vmax.f32 %v398_v18, %v779_v19 }
 0x1e8   :  { %v1696_v21 = vmax.f32 %v1266_v17, %v1636_v16 }
 0x1ea   :  { %v1749_v22 = vadd.f32 %v3317_v44, %v1696_v21 }
 0x1ec   :  { %v1798_v24 = vmax.f32 %v1749_v22, 0.0 }
 0x1ed   :  { %v1209_v26 = vpop.f32.mrf.mxu2  ;;  %v1639_v27 = vpop.f32.mrf.mxu3 }
 0x1ee   :  { %v2751_v28 = vpack.c.bf16 %v1798_v24, %v1797_v23  ;;  %v400_v29 = vpop.f32.mrf.mxu0  ;;  %v781_v30 = vpop.f32.mrf.mxu1  ;;  %v1267_v31 = vmax.f32 %v837_v25, %v1209_v26 }
 0x1ef   :  { %v838_v33 = vmax.f32 %v400_v29, %v781_v30 }
 0x1f0   :  { %2783 = vst [vmem:[%s3351_s3 + $0xa8] sm:$0xff] %v2751_v28   ;;  %v1697_v32 = vmax.f32 %v1267_v31, %v1639_v27 }
 0x1f2   :  { %v1750_v39 = vadd.f32 %v3317_v44, %v1697_v32 }
 0x1f4   :  { %v1799_v42 = vmax.f32 %v1750_v39, 0.0 }
 0x1f5   :  { %v1211_v34 = vpop.f32.mrf.mxu2  ;;  %v1641_v35 = vpop.f32.mrf.mxu3 }
 0x1f6   :  { %v1268_v36 = vmax.f32 %v838_v33, %v1211_v34  ;;  %v403_v37 = vpop.f32.mrf.mxu0  ;;  %v784_v38 = vpop.f32.mrf.mxu1 }
 0x1f7   :  { %v839_v47 = vmax.f32 %v403_v37, %v784_v38 }
 0x1f8   :  { %v1698_v40 = vmax.f32 %v1268_v36, %v1641_v35 }
 0x1fa   :  { %v1751_v41 = vadd.f32 %v3317_v44, %v1698_v40 }
 0x1fc   :  { %v1800_v43 = vmax.f32 %v1751_v41, 0.0 }
 0x1fd   :  { %v1214_v45 = vpop.f32.mrf.mxu2  ;;  %v1644_v46 = vpop.f32.mrf.mxu3 }
 0x1fe   :  { %v2756_v48 = vpack.c.bf16 %v1800_v43, %v1799_v42  ;;  %v405_v49 = vpop.f32.mrf.mxu0  ;;  %v786_v50 = vpop.f32.mrf.mxu1  ;;  %v1269_v51 = vmax.f32 %v839_v47, %v1214_v45 }
 0x1ff   :  { %v840_v53 = vmax.f32 %v405_v49, %v786_v50 }
 0x200   :  { %2784 = vst [vmem:[%s3351_s3 + $0xb0] sm:$0xff] %v2756_v48   ;;  %v1699_v52 = vmax.f32 %v1269_v51, %v1644_v46 }
 0x202   :  { %v1752_v59 = vadd.f32 %v3317_v44, %v1699_v52 }
 0x204   :  { %v1801_v63 = vmax.f32 %v1752_v59, 0.0 }
 0x205   :  { %v1216_v54 = vpop.f32.mrf.mxu2  ;;  %v1646_v55 = vpop.f32.mrf.mxu3 }
 0x206   :  { %v1270_v56 = vmax.f32 %v840_v53, %v1216_v54  ;;  %v408_v57 = vpop.f32.mrf.mxu0  ;;  %v789_v58 = vpop.f32.mrf.mxu1 }
 0x207   :  { %v841_v62 = vmax.f32 %v408_v57, %v789_v58 }
 0x208   :  { %v1700_v60 = vmax.f32 %v1270_v56, %v1646_v55 }
 0x20a   :  { %v1753_v61 = vadd.f32 %v3317_v44, %v1700_v60 }
 0x20c   :  { %v1802_v0 = vmax.f32 %v1753_v61, 0.0 }
 0x20d   :  { %v1219_v1 = vpop.f32.mrf.mxu2  ;;  %v1649_v2 = vpop.f32.mrf.mxu3 }
 0x20e   :  { %v2761_v3 = vpack.c.bf16 %v1802_v0, %v1801_v63  ;;  %v1271_v4 = vmax.f32 %v841_v62, %v1219_v1  ;;  %v410_v5 = vpop.f32.mrf.mxu0  ;;  %v791_v6 = vpop.f32.mrf.mxu1 }
 0x210   :  { %2785 = vst [vmem:[%s3351_s3 + $0xb8] sm:$0xff] %v2761_v3   ;;  %v1701_v7 = vmax.f32 %v1271_v4, %v1649_v2 }
 0x212   :  { %v1754_v8 = vadd.f32 %v3317_v44, %v1701_v7 }
 0x214   :  { %v1803_v9 = vmax.f32 %v1754_v8, 0.0 }
 0x215   :  { %v1221_v10 = vpop.f32.mrf.mxu2  ;;  %v1651_v11 = vpop.f32.mrf.mxu3 }
 0x216   :  { %v1852_v12 = vpack.c.bf16 %v1803_v9, %v1803_v9 }
 0x218   :  { %1901 = vst [vmem:[%s3351_s3 + $0xc0] sm:$0xf] %v1852_v12 }

// kernel: net_forward.4
= control target key start
LH: loop header
LB: loop body
LE: loop exit
PB: predicated region body
PF: predicated region fallthrough
CT: control target
= control target key end

     0   :  { %s1221_s1 = inlined_call_operand.vmem [shape: bf16[256,128], index: 1, kind: input, shape index: {}]   ;;  %s1222_s0 = inlined_call_operand.vmem [shape: bf16[4,56,256], index: 0, kind: input, shape index: {}]   ;;  %s1223_s2 = inlined_call_operand.vmem [shape: f32[1,128], index: 2, kind: input, shape index: {}]   ;;  %s1224_s3 = inlined_call_operand.vmem [shape: bf16[56,128], index: 3, kind: output, shape index: {}]  }
   0x1   :  { %v864_v0 = vld [vmem:[%s1221_s1 + $0x38] sm:$0xff]  ;;  %v876_v2 = vld [vmem:[%s1221_s1 + $0x30] sm:$0xff]  ;;  %v890_v4 = vld [vmem:[%s1221_s1 + $0x28] sm:$0xff] }
   0x2   :  { %v869_v1 = vld [vmem:[%s1221_s1 + $0x78] sm:$0xff]  ;;  %186 = vmatpush.bf16.msra.mxu0 %v864_v0  ;;  %v881_v3 = vld [vmem:[%s1221_s1 + $0x70] sm:$0xff]  ;;  %287 = vmatpush.bf16.msra.mxu2 %v864_v0  ;;  %v895_v5 = vld [vmem:[%s1221_s1 + $0x68] sm:$0xff] }
   0x3   :  { %214 = vmatpush.bf16.msra.mxu1 %v869_v1  ;;  %315 = vmatpush.bf16.msra.mxu3 %v869_v1  ;;  %v904_v6 = vld [vmem:[%s1221_s1 + $0x20] sm:$0xff]  ;;  %v918_v8 = vld [vmem:[%s1221_s1 + $0x18] sm:$0xff]  ;;  %v932_v10 = vld [vmem:[%s1221_s1 + $0x10] sm:$0xff] }
   0x4   :  { %v909_v7 = vld [vmem:[%s1221_s1 + $0x60] sm:$0xff]  ;;  %v923_v9 = vld [vmem:[%s1221_s1 + $0x58] sm:$0xff]  ;;  %v937_v11 = vld [vmem:[%s1221_s1 + $0x50] sm:$0xff] }
   0x5   :  { %v946_v12 = vld [vmem:[%s1221_s1 + $0x8] sm:$0xff]  ;;  %v958_v14 = vld [vmem:[%s1221_s1] sm:$0xff]  ;;  %v699_v20 = vld [vmem:[%s1222_s0 + $0x38] sm:$0xf] }
   0x6   :  { %187 = vmatpush.bf16.msra.mxu0 %v876_v2  ;;  %288 = vmatpush.bf16.msra.mxu2 %v876_v2  ;;  %v951_v13 = vld [vmem:[%s1221_s1 + $0x48] sm:$0xff]  ;;  %v963_v15 = vld [vmem:[%s1221_s1 + $0x40] sm:$0xff]  ;;  %v805_v22 = vld [vmem:[%s1222_s0 + $0x3c] sm:$0xf] }
   0x7   :  { %215 = vmatpush.bf16.msra.mxu1 %v881_v3  ;;  %316 = vmatpush.bf16.msra.mxu3 %v881_v3  ;;  %v604_v16 = vld [vmem:[%s1222_s0] sm:$0xf]  ;;  %v800_v17 = vld [vmem:[%s1222_s0 + $0x4] sm:$0xf0]  ;;  %v799_v18 = vld [vmem:[%s1222_s0 + $0x4] sm:$0xf] }
   0x8   :  { %v606_v19 = vld [vmem:[%s1222_s0 + $0x8] sm:$0xf0]  ;;  %v806_v21 = vld [vmem:[%s1222_s0 + $0x3c] sm:$0xf0]  ;;  %v701_v23 = vld [vmem:[%s1222_s0 + $0x40] sm:$0xf0]  ;;  %v605_v24 = vor.u32 %v800_v17, %v604_v16 }
   0x9   :  { %v609_v25 = vor.u32 %v799_v18, %v606_v19  ;;  %v700_v26 = vor.u32 %v806_v21, %v699_v20  ;;  %v704_v27 = vor.u32 %v805_v22, %v701_v23  ;;  %v612_v28 = vld [vmem:[%s1222_s0 + $0x10] sm:$0xf]  ;;  %v802_v29 = vld [vmem:[%s1222_s0 + $0x14] sm:$0xf0]  ;;  %v801_v30 = vld [vmem:[%s1222_s0 + $0x14] sm:$0xf] }
   0xa   :  { %188 = vmatpush.bf16.msra.mxu0 %v890_v4  ;;  %289 = vmatpush.bf16.msra.mxu2 %v890_v4  ;;  %v614_v31 = vld [vmem:[%s1222_s0 + $0x18] sm:$0xf0]  ;;  %v707_v32 = vld [vmem:[%s1222_s0 + $0x48] sm:$0xf]  ;;  %v808_v33 = vld [vmem:[%s1222_s0 + $0x4c] sm:$0xf0]  ;;  %v613_v36 = vor.u32 %v802_v29, %v612_v28 }
   0xb   :  { %216 = vmatpush.bf16.msra.mxu1 %v895_v5  ;;  %317 = vmatpush.bf16.msra.mxu3 %v895_v5  ;;  %v807_v34 = vld [vmem:[%s1222_s0 + $0x4c] sm:$0xf]  ;;  %v709_v35 = vld [vmem:[%s1222_s0 + $0x50] sm:$0xf0]  ;;  %v617_v37 = vor.u32 %v801_v30, %v614_v31  ;;  %v708_v38 = vor.u32 %v808_v33, %v707_v32  ;;  %v620_v40 = vld [vmem:[%s1222_s0 + $0x20] sm:$0xf] }
   0xc   :  { %v712_v39 = vor.u32 %v807_v34, %v709_v35  ;;  %v804_v41 = vld [vmem:[%s1222_s0 + $0x24] sm:$0xf0]  ;;  %v803_v42 = vld [vmem:[%s1222_s0 + $0x24] sm:$0xf]  ;;  %v622_v43 = vld [vmem:[%s1222_s0 + $0x28] sm:$0xf0] }
   0xd   :  { %v715_v44 = vld [vmem:[%s1222_s0 + $0x58] sm:$0xf]  ;;  %v810_v45 = vld [vmem:[%s1222_s0 + $0x5c] sm:$0xf0]  ;;  %v809_v46 = vld [vmem:[%s1222_s0 + $0x5c] sm:$0xf]  ;;  %v621_v48 = vor.u32 %v804_v41, %v620_v40  ;;  %v625_v49 = vor.u32 %v803_v42, %v622_v43 }
   0xe   :  { %189 = vmatpush.bf16.msra.mxu0 %v904_v6  ;;  %290 = vmatpush.bf16.msra.mxu2 %v904_v6  ;;  %v717_v47 = vld [vmem:[%s1222_s0 + $0x60] sm:$0xf0]  ;;  %v716_v50 = vor.u32 %v810_v45, %v715_v44  ;;  %v52_v52 = vld [vmem:[%s1222_s0 + $0x30] sm:$0xff]  ;;  %v696_v53 = vld [vmem:[%s1222_s0 + $0x68] sm:$0xff] }
   0xf   :  { %217 = vmatpush.bf16.msra.mxu1 %v909_v7  ;;  %318 = vmatpush.bf16.msra.mxu3 %v909_v7  ;;  %v720_v51 = vor.u32 %v809_v46, %v717_v47  ;;  %v72_v54 = vunpack.c.l.b16 %v52_v52  ;;  %v73_v55 = vunpack.c.h.b16 %v52_v52  ;;  %v269_v56 = vunpack.c.l.b16 %v696_v53  ;;  %v730_v62 = vld [vmem:[%s1222_s0 + $0x70] sm:$0xf]  ;;  %v812_v63 = vld [vmem:[%s1222_s0 + $0x74] sm:$0xf0]  ;;  %v819_v16 = vld [vmem:[%s1222_s0 + $0xbc] sm:$0xf] }
  0x10   :  { %v270_v57 = vunpack.c.h.b16 %v696_v53  ;;  %v771_v17 = vld [vmem:[%s1222_s0 + $0xc0] sm:$0xf0]  ;;  %v746_v22 = vld [vmem:[%s1222_s0 + $0x90] sm:$0xf]  ;;  %v816_v23 = vld [vmem:[%s1222_s0 + $0x94] sm:$0xf0] }
  0x11   :  { %v80_v58 = vpack.c.b16 %v72_v54, %v72_v54  ;;  %v81_v59 = vpack.c.b16 %v73_v55, %v73_v55  ;;  %v277_v60 = vpack.c.b16 %v269_v56, %v269_v56  ;;  %v774_v21 = vor.u32 %v819_v16, %v771_v17  ;;  %v821_v28 = vld [vmem:[%s1222_s0 + $0xcc] sm:$0xf]  ;;  %v779_v29 = vld [vmem:[%s1222_s0 + $0xd0] sm:$0xf0]  ;;  %v727_v34 = vld [vmem:[%s1222_s0 + $0xa0] sm:$0xff] }
  0x12   :  { %190 = vmatpush.bf16.msra.mxu0 %v918_v8  ;;  %291 = vmatpush.bf16.msra.mxu2 %v918_v8  ;;  %v278_v61 = vpack.c.b16 %v270_v57, %v270_v57  ;;  %v747_v30 = vor.u32 %v816_v23, %v746_v22  ;;  %v782_v33 = vor.u32 %v821_v28, %v779_v29  ;;  %v758_v35 = vld [vmem:[%s1222_s0 + $0xd8] sm:$0xff] }
  0x13   :  { %218 = vmatpush.bf16.msra.mxu1 %v923_v9  ;;  %319 = vmatpush.bf16.msra.mxu3 %v923_v9 }
  0x16   :  { %191 = vmatpush.bf16.msra.mxu0 %v932_v10  ;;  %292 = vmatpush.bf16.msra.mxu2 %v932_v10 }
  0x17   :  { %219 = vmatpush.bf16.msra.mxu1 %v937_v11  ;;  %320 = vmatpush.bf16.msra.mxu3 %v937_v11 }
  0x1a   :  { %192 = vmatpush.bf16.msra.mxu0 %v946_v12  ;;  %293 = vmatpush.bf16.msra.mxu2 %v946_v12 }
  0x1b   :  { %220 = vmatpush.bf16.msra.mxu1 %v951_v13  ;;  %321 = vmatpush.bf16.msra.mxu3 %v951_v13 }
  0x1e   :  { %193 = vmatpush.bf16.msra.mxu0 %v958_v14  ;;  %294 = vmatpush.bf16.msra.mxu2 %v958_v14 }
  0x1f   :  { %221 = vmatpush.bf16.msra.mxu1 %v963_v15  ;;  %322 = vmatpush.bf16.msra.mxu3 %v963_v15 }
  0x21   :  { %194 = vmatmul.bf16.vlgmr.msra.gmra.mxu0 %v605_v24  ;;  %295 = vmatmul.bf16.vlgmr.msra.gmra.mxu2 %v700_v26  ;;  %v815_v24 = vld [vmem:[%s1222_s0 + $0x94] sm:$0xf]  ;;  %v777_v26 = vld [vmem:[%s1222_s0 + $0xc8] sm:$0xf] }
  0x22   :  { %503 = vmatpush.bf16.msrb.mxu2 %v864_v0  ;;  %222 = vmatmul.bf16.vlgmr.msra.gmra.mxu1 %v609_v25  ;;  %v748_v25 = vld [vmem:[%s1222_s0 + $0x98] sm:$0xf0] }
  0x23   :  { %531 = vmatpush.bf16.msrb.mxu3 %v869_v1  ;;  %395 = vmatpush.bf16.msrb.mxu0 %v864_v0  ;;  %v811_v0 = vld [vmem:[%s1222_s0 + $0x74] sm:$0xf]  ;;  %v751_v31 = vor.u32 %v815_v24, %v748_v25 }
  0x24   :  { %323 = vmatmul.bf16.vlgmr.msra.gmra.mxu3 %v704_v27  ;;  %423 = vmatpush.bf16.msrb.mxu1 %v869_v1  ;;  %v732_v1 = vld [vmem:[%s1222_s0 + $0x78] sm:$0xf0]  ;;  %v822_v27 = vld [vmem:[%s1222_s0 + $0xcc] sm:$0xf0] }
  0x25   :  { %v778_v32 = vor.u32 %v822_v27, %v777_v26 }
  0x26   :  { %504 = vmatpush.bf16.msrb.mxu2 %v876_v2 }
  0x27   :  { %532 = vmatpush.bf16.msrb.mxu3 %v881_v3  ;;  %396 = vmatpush.bf16.msrb.mxu0 %v876_v2  ;;  %v761_v2 = vld [vmem:[%s1222_s0 + $0xa8] sm:$0xf] }
  0x28   :  { %424 = vmatpush.bf16.msrb.mxu1 %v881_v3  ;;  %v818_v3 = vld [vmem:[%s1222_s0 + $0xac] sm:$0xf0] }
  0x2a   :  { %505 = vmatpush.bf16.msrb.mxu2 %v890_v4 }
  0x2b   :  { %533 = vmatpush.bf16.msrb.mxu3 %v895_v5  ;;  %397 = vmatpush.bf16.msrb.mxu0 %v890_v4  ;;  %v817_v4 = vld [vmem:[%s1222_s0 + $0xac] sm:$0xf] }
  0x2c   :  { %425 = vmatpush.bf16.msrb.mxu1 %v895_v5  ;;  %v763_v5 = vld [vmem:[%s1222_s0 + $0xb0] sm:$0xf0] }
  0x2e   :  { %506 = vmatpush.bf16.msrb.mxu2 %v904_v6 }
  0x2f   :  { %534 = vmatpush.bf16.msrb.mxu3 %v909_v7  ;;  %398 = vmatpush.bf16.msrb.mxu0 %v904_v6  ;;  %v731_v6 = vor.u32 %v812_v63, %v730_v62 }
  0x30   :  { %426 = vmatpush.bf16.msrb.mxu1 %v909_v7  ;;  %v735_v7 = vor.u32 %v811_v0, %v732_v1 }
  0x31   :  { %199 = vmatmul.bf16.gmra.mxu0 %v613_v36  ;;  %300 = vmatmul.bf16.gmra.mxu2 %v708_v38  ;;  %v377_v36 = vunpack.c.l.b16 %v727_v34  ;;  %v485_v38 = vunpack.c.l.b16 %v758_v35 }
  0x32   :  { %507 = vmatpush.bf16.msrb.mxu2 %v918_v8  ;;  %227 = vmatmul.bf16.gmra.mxu1 %v617_v37  ;;  %v378_v37 = vunpack.c.h.b16 %v727_v34 }
  0x33   :  { %535 = vmatpush.bf16.msrb.mxu3 %v923_v9  ;;  %399 = vmatpush.bf16.msrb.mxu0 %v918_v8  ;;  %v762_v8 = vor.u32 %v818_v3, %v761_v2  ;;  %v385_v40 = vpack.c.b16 %v377_v36, %v377_v36  ;;  %v493_v42 = vpack.c.b16 %v485_v38, %v485_v38  ;;  %v1190_v38 = vld [vmem:[%s1223_s2] ss:$0 sm:$0xff] }
  0x34   :  { %328 = vmatmul.bf16.gmra.mxu3 %v712_v39  ;;  %427 = vmatpush.bf16.msrb.mxu1 %v923_v9  ;;  %v766_v9 = vor.u32 %v817_v4, %v763_v5  ;;  %v486_v39 = vunpack.c.h.b16 %v758_v35  ;;  %v386_v41 = vpack.c.b16 %v378_v37, %v378_v37 }
  0x36   :  { %508 = vmatpush.bf16.msrb.mxu2 %v932_v10  ;;  %v494_v43 = vpack.c.b16 %v486_v39, %v486_v39 }
  0x37   :  { %536 = vmatpush.bf16.msrb.mxu3 %v937_v11  ;;  %400 = vmatpush.bf16.msrb.mxu0 %v932_v10  ;;  %v738_v10 = vld [vmem:[%s1222_s0 + $0x80] sm:$0xf] }
  0x38   :  { %428 = vmatpush.bf16.msrb.mxu1 %v937_v11  ;;  %v814_v11 = vld [vmem:[%s1222_s0 + $0x84] sm:$0xf0] }
  0x39   :  { %v739_v18 = vor.u32 %v814_v11, %v738_v10 }
  0x3a   :  { %509 = vmatpush.bf16.msrb.mxu2 %v946_v12 }
  0x3b   :  { %537 = vmatpush.bf16.msrb.mxu3 %v951_v13  ;;  %401 = vmatpush.bf16.msrb.mxu0 %v946_v12  ;;  %v813_v12 = vld [vmem:[%s1222_s0 + $0x84] sm:$0xf] }
  0x3c   :  { %429 = vmatpush.bf16.msrb.mxu1 %v951_v13  ;;  %v740_v13 = vld [vmem:[%s1222_s0 + $0x88] sm:$0xf0] }
  0x3d   :  { %v743_v19 = vor.u32 %v813_v12, %v740_v13 }
  0x3e   :  { %510 = vmatpush.bf16.msrb.mxu2 %v958_v14 }
  0x3f   :  { %538 = vmatpush.bf16.msrb.mxu3 %v963_v15  ;;  %402 = vmatpush.bf16.msrb.mxu0 %v958_v14  ;;  %v769_v14 = vld [vmem:[%s1222_s0 + $0xb8] sm:$0xf] }
  0x40   :  { %430 = vmatpush.bf16.msrb.mxu1 %v963_v15  ;;  %v820_v15 = vld [vmem:[%s1222_s0 + $0xbc] sm:$0xf0] }
  0x41   :  { %204 = vmatmul.bf16.gmra.mxu0 %v621_v48  ;;  %305 = vmatmul.bf16.gmra.mxu2 %v716_v50  ;;  %v770_v20 = vor.u32 %v820_v15, %v769_v14 }
  0x42   :  { %232 = vmatmul.bf16.gmra.mxu1 %v625_v49 }
  0x44   :  { %333 = vmatmul.bf16.gmra.mxu3 %v720_v51 }
  0x51   :  { %209 = vmatmul.bf16.gmra.mxu0 %v80_v58  ;;  %310 = vmatmul.bf16.gmra.mxu2 %v277_v60 }
  0x52   :  { %237 = vmatmul.bf16.gmra.mxu1 %v81_v59 }
  0x54   :  { %338 = vmatmul.bf16.gmra.mxu3 %v278_v61 }
  0x61   :  { %403 = vmatmul.bf16.vlgmr.msrb.gmra.mxu0 %v731_v6  ;;  %511 = vmatmul.bf16.vlgmr.msrb.gmra.mxu2 %v762_v8 }
  0x62   :  { %431 = vmatmul.bf16.vlgmr.msrb.gmra.mxu1 %v735_v7 }
  0x64   :  { %539 = vmatmul.bf16.vlgmr.msrb.gmra.mxu3 %v766_v9 }
  0x71   :  { %408 = vmatmul.bf16.gmra.mxu0 %v739_v18  ;;  %516 = vmatmul.bf16.gmra.mxu2 %v770_v20 }
  0x72   :  { %436 = vmatmul.bf16.gmra.mxu1 %v743_v19 }
  0x74   :  { %544 = vmatmul.bf16.gmra.mxu3 %v774_v21 }
  0x81   :  { %413 = vmatmul.bf16.gmra.mxu0 %v747_v30  ;;  %521 = vmatmul.bf16.gmra.mxu2 %v778_v32 }
  0x82   :  { %441 = vmatmul.bf16.gmra.mxu1 %v751_v31 }
  0x84   :  { %549 = vmatmul.bf16.gmra.mxu3 %v782_v33 }
  0x91   :  { %418 = vmatmul.bf16.gmra.mxu0 %v385_v40  ;;  %526 = vmatmul.bf16.gmra.mxu2 %v493_v42 }
  0x92   :  { %446 = vmatmul.bf16.gmra.mxu1 %v386_v41 }
  0x94   :  { %554 = vmatmul.bf16.gmra.mxu3 %v494_v43 }
  0x9e   :  { %v195_v44 = vpop.f32.mrf.mxu0 }
  0x9f   :  { %v223_v45 = vpop.f32.mrf.mxu1 }
  0xa0   :  { %v224_v46 = vadd.f32 %v223_v45, %v195_v44 }
  0xa4   :  { %v296_v47 = vpop.f32.mrf.mxu2 }
  0xa6   :  { %v197_v50 = vpop.f32.mrf.mxu0 }
  0xa7   :  { %v324_v48 = vpop.f32.mrf.mxu3  ;;  %v225_v51 = vpop.f32.mrf.mxu1 }
  0xa8   :  { %v325_v49 = vadd.f32 %v324_v48, %v296_v47  ;;  %v226_v52 = vadd.f32 %v225_v51, %v197_v50 }
  0xaa   :  { %v343_v53 = vmax.f32 %v224_v46, %v325_v49 }
  0xac   :  { %v298_v54 = vpop.f32.mrf.mxu2 }
  0xae   :  { %v200_v56 = vpop.f32.mrf.mxu0 }
  0xaf   :  { %v326_v55 = vpop.f32.mrf.mxu3  ;;  %v228_v57 = vpop.f32.mrf.mxu1 }
  0xb0   :  { %v1161_v58 = vadd.f32 %v228_v57, %v200_v56  ;;  %v327_v32 = vadd.f32 %v326_v55, %v298_v54 }
  0xb2   :  { %v344_v36 = vmax.f32 %v226_v52, %v327_v32 }
  0xb4   :  { %v301_v59 = vpop.f32.mrf.mxu2 }
  0xb6   :  { %v202_v62 = vpop.f32.mrf.mxu0 }
  0xb7   :  { %v329_v60 = vpop.f32.mrf.mxu3  ;;  %v230_v63 = vpop.f32.mrf.mxu1 }
  0xb8   :  { %v1163_v61 = vadd.f32 %v329_v60, %v301_v59  ;;  %v1165_v0 = vadd.f32 %v230_v63, %v202_v62 }
  0xba   :  { %v345_v1 = vmax.f32 %v1161_v58, %v1163_v61 }
  0xbc   :  { %v303_v2 = vpop.f32.mrf.mxu2 }
  0xbe   :  { %v205_v4 = vpop.f32.mrf.mxu0 }
  0xbf   :  { %v331_v3 = vpop.f32.mrf.mxu3  ;;  %v233_v5 = vpop.f32.mrf.mxu1 }
  0xc0   :  { %v1169_v6 = vadd.f32 %v233_v5, %v205_v4  ;;  %v332_v56 = vadd.f32 %v331_v3, %v303_v2 }
  0xc2   :  { %v346_v60 = vmax.f32 %v1165_v0, %v332_v56 }
  0xc4   :  { %v306_v7 = vpop.f32.mrf.mxu2 }
  0xc6   :  { %v207_v10 = vpop.f32.mrf.mxu0 }
  0xc7   :  { %v334_v8 = vpop.f32.mrf.mxu3  ;;  %v235_v11 = vpop.f32.mrf.mxu1 }
  0xc8   :  { %v1171_v9 = vadd.f32 %v334_v8, %v306_v7  ;;  %v1173_v12 = vadd.f32 %v235_v11, %v207_v10 }
  0xca   :  { %v347_v13 = vmax.f32 %v1169_v6, %v1171_v9 }
  0xcc   :  { %v1177_v14 = vpop.f32.mrf.mxu2 }
  0xce   :  { %v210_v16 = vpop.f32.mrf.mxu0 }
  0xcf   :  { %v1179_v15 = vpop.f32.mrf.mxu3  ;;  %v238_v17 = vpop.f32.mrf.mxu1 }
  0xd0   :  { %v1181_v18 = vadd.f32 %v238_v17, %v210_v16 }
  0xd4   :  { %v1183_v19 = vpop.f32.mrf.mxu2 }
  0xd6   :  { %v212_v21 = vpop.f32.mrf.mxu0 }
  0xd7   :  { %v1185_v20 = vpop.f32.mrf.mxu3  ;;  %v240_v22 = vpop.f32.mrf.mxu1 }
  0xdc   :  { %v313_v23 = vpop.f32.mrf.mxu2 }
  0xde   :  { %v404_v25 = vpop.f32.mrf.mxu0 }
  0xdf   :  { %v341_v24 = vpop.f32.mrf.mxu3  ;;  %v432_v26 = vpop.f32.mrf.mxu1 }
  0xe0   :  { %v433_v29 = vadd.f32 %v432_v26, %v404_v25  ;;  %v337_v24 = vadd.f32 %v1179_v15, %v1177_v14  ;;  %v340_v14 = vadd.f32 %v1185_v20, %v1183_v19 }
  0xe2   :  { %v451_v34 = vmax.f32 %v343_v53, %v433_v29  ;;  %v349_v9 = vmax.f32 %v1181_v18, %v340_v14 }
  0xe4   :  { %v512_v27 = vpop.f32.mrf.mxu2 }
  0xe6   :  { %v406_v30 = vpop.f32.mrf.mxu0 }
  0xe7   :  { %v540_v28 = vpop.f32.mrf.mxu3  ;;  %v434_v31 = vpop.f32.mrf.mxu1 }
  0xe8   :  { %v541_v33 = vadd.f32 %v540_v28, %v512_v27  ;;  %v435_v35 = vadd.f32 %v434_v31, %v406_v30  ;;  %v348_v28 = vmax.f32 %v1173_v12, %v337_v24 }
  0xea   :  { %v559_v37 = vmax.f32 %v451_v34, %v541_v33  ;;  %v452_v41 = vmax.f32 %v344_v36, %v435_v35 }
  0xec   :  { %v514_v39 = vpop.f32.mrf.mxu2  ;;  %v570_v45 = vadd.f32 %v1190_v38, %v559_v37 }
  0xee   :  { %v409_v43 = vpop.f32.mrf.mxu0  ;;  %v577_v48 = vmax.f32 %v570_v45, 0.0 }
  0xef   :  { %v542_v40 = vpop.f32.mrf.mxu3  ;;  %v437_v44 = vpop.f32.mrf.mxu1 }
  0xf0   :  { %v543_v42 = vadd.f32 %v542_v40, %v514_v39  ;;  %v438_v53 = vadd.f32 %v437_v44, %v409_v43 }
  0xf2   :  { %v560_v46 = vmax.f32 %v452_v41, %v543_v42  ;;  %v453_v58 = vmax.f32 %v345_v1, %v438_v53 }
  0xf4   :  { %v571_v47 = vadd.f32 %v1190_v38, %v560_v46  ;;  %v517_v50 = vpop.f32.mrf.mxu2 }
  0xf6   :  { %v578_v49 = vmax.f32 %v571_v47, 0.0  ;;  %v411_v54 = vpop.f32.mrf.mxu0 }
  0xf7   :  { %v545_v51 = vpop.f32.mrf.mxu3  ;;  %v439_v55 = vpop.f32.mrf.mxu1 }
  0xf8   :  { %v826_v52 = vpack.c.bf16 %v578_v49, %v577_v48  ;;  %v546_v57 = vadd.f32 %v545_v51, %v517_v50  ;;  %v440_v59 = vadd.f32 %v439_v55, %v411_v54 }
  0xfa   :  { %827 = vst [vmem:[%s1224_s3] sm:$0xff] %v826_v52   ;;  %v561_v61 = vmax.f32 %v453_v58, %v546_v57  ;;  %v454_v4 = vmax.f32 %v346_v60, %v440_v59 }
  0xfc   :  { %v519_v62 = vpop.f32.mrf.mxu2  ;;  %v572_v10 = vadd.f32 %v1190_v38, %v561_v61 }
  0xfe   :  { %v414_v7 = vpop.f32.mrf.mxu0  ;;  %v579_v3 = vmax.f32 %v572_v10, 0.0 }
  0xff   :  { %v547_v63 = vpop.f32.mrf.mxu3  ;;  %v442_v8 = vpop.f32.mrf.mxu1 }
 0x100   :  { %v548_v5 = vadd.f32 %v547_v63, %v519_v62  ;;  %v443_v22 = vadd.f32 %v442_v8, %v414_v7 }
 0x102   :  { %v562_v11 = vmax.f32 %v454_v4, %v548_v5  ;;  %v455_v26 = vmax.f32 %v347_v13, %v443_v22 }
 0x104   :  { %v573_v2 = vadd.f32 %v1190_v38, %v562_v11  ;;  %v522_v17 = vpop.f32.mrf.mxu2 }
 0x106   :  { %v580_v16 = vmax.f32 %v573_v2, 0.0  ;;  %v416_v23 = vpop.f32.mrf.mxu0 }
 0x107   :  { %v550_v21 = vpop.f32.mrf.mxu3  ;;  %v444_v0 = vpop.f32.mrf.mxu1 }
 0x108   :  { %v831_v1 = vpack.c.bf16 %v580_v16, %v579_v3  ;;  %v551_v25 = vadd.f32 %v550_v21, %v522_v17  ;;  %v445_v27 = vadd.f32 %v444_v0, %v416_v23 }
 0x10a   :  { %838 = vst [vmem:[%s1224_s3 + $0x8] sm:$0xff] %v831_v1   ;;  %v563_v29 = vmax.f32 %v455_v26, %v551_v25  ;;  %v456_v32 = vmax.f32 %v348_v28, %v445_v27 }
 0x10c   :  { %v524_v30 = vpop.f32.mrf.mxu2  ;;  %v574_v15 = vadd.f32 %v1190_v38, %v563_v29 }
 0x10e   :  { %v419_v34 = vpop.f32.mrf.mxu0  ;;  %v581_v13 = vmax.f32 %v574_v15, 0.0 }
 0x10f   :  { %v552_v31 = vpop.f32.mrf.mxu3  ;;  %v447_v35 = vpop.f32.mrf.mxu1 }
 0x110   :  { %v553_v33 = vadd.f32 %v552_v31, %v524_v30  ;;  %v448_v6 = vadd.f32 %v447_v35, %v419_v34 }
 0x112   :  { %v564_v36 = vmax.f32 %v456_v32, %v553_v33  ;;  %v457_v42 = vmax.f32 %v349_v9, %v448_v6 }
 0x114   :  { %v575_v37 = vadd.f32 %v1190_v38, %v564_v36  ;;  %v527_v39 = vpop.f32.mrf.mxu2 }
 0x116   :  { %v582_v12 = vmax.f32 %v575_v37, 0.0  ;;  %v421_v44 = vpop.f32.mrf.mxu0 }
 0x117   :  { %v555_v40 = vpop.f32.mrf.mxu3  ;;  %v449_v45 = vpop.f32.mrf.mxu1 }
 0x118   :  { %v836_v41 = vpack.c.bf16 %v582_v12, %v581_v13  ;;  %v556_v43 = vadd.f32 %v555_v40, %v527_v39 }
 0x11a   :  { %839 = vst [vmem:[%s1224_s3 + $0x10] sm:$0xff] %v836_v41   ;;  %v565_v19 = vmax.f32 %v457_v42, %v556_v43 }
 0x11c   :  { %v576_v20 = vadd.f32 %v1190_v38, %v565_v19  ;;  %v529_v47 = vpop.f32.mrf.mxu2 }
 0x11e   :  { %v583_v46 = vmax.f32 %v576_v20, 0.0 }
 0x11f   :  { %v557_v48 = vpop.f32.mrf.mxu3 }
 0x120   :  { %v590_v18 = vpack.c.bf16 %v583_v46, %v583_v46 }
 0x122   :  { %597 = vst [vmem:[%s1224_s3 + $0x18] sm:$0xf] %v590_v18 }

// kernel: net_forward.5
= control target key start
LH: loop header
LB: loop body
LE: loop exit
PB: predicated region body
PF: predicated region fallthrough
CT: control target
= control target key end

     0   :  { %s4049_s1 = inlined_call_operand.vmem [shape: bf16[3200,128], index: 1, kind: input, shape index: {}]   ;;  %s4050_s0 = inlined_call_operand.vmem [shape: bf16[8,3200], index: 0, kind: input, shape index: {}]   ;;  %s4051_s2 = inlined_call_operand.vmem [shape: f32[1,128], index: 2, kind: input, shape index: {}]   ;;  %s4052_s4 = inlined_call_operand.vmem [shape: f32[1,128], index: 4, kind: input, shape index: {}]   ;;  %s4053_s3 = inlined_call_operand.vmem [shape: bf16[128,128], index: 3, kind: input, shape index: {}]   ;;  %s4054_s5 = inlined_call_operand.vmem [shape: bf16[128,128], index: 5, kind: input, shape index: {}]   ;;  %s4055_s6 = inlined_call_operand.vmem [shape: f32[1,128], index: 6, kind: input, shape index: {}]   ;;  %s4056_s7 = inlined_call_operand.vmem [shape: f32[8,128], index: 7, kind: output, shape index: {}]  }
   0x1   :  { %v3098_v0 = vld [vmem:[%s4049_s1 + $0x38] sm:$0xff]  ;;  %v3097_v4 = vld [vmem:[%s4049_s1 + $0x30] sm:$0xff]  ;;  %v3096_v8 = vld [vmem:[%s4049_s1 + $0x28] sm:$0xff] }
   0x2   :  { %v3114_v1 = vld [vmem:[%s4049_s1 + $0xb8] sm:$0xff]  ;;  %1731 = vmatpush.bf16.msra.mxu0 %v3098_v0  ;;  %v3113_v5 = vld [vmem:[%s4049_s1 + $0xb0] sm:$0xff]  ;;  %v3112_v9 = vld [vmem:[%s4049_s1 + $0xa8] sm:$0xff] }
   0x3   :  { %v3106_v2 = vld [vmem:[%s4049_s1 + $0x78] sm:$0xff]  ;;  %1757 = vmatpush.bf16.msra.mxu2 %v3114_v1  ;;  %v3105_v6 = vld [vmem:[%s4049_s1 + $0x70] sm:$0xff]  ;;  %v3104_v10 = vld [vmem:[%s4049_s1 + $0x68] sm:$0xff] }
   0x4   :  { %v3122_v3 = vld [vmem:[%s4049_s1 + $0xf8] sm:$0xff]  ;;  %1744 = vmatpush.bf16.msra.mxu1 %v3106_v2  ;;  %v3121_v7 = vld [vmem:[%s4049_s1 + $0xf0] sm:$0xff]  ;;  %v3120_v11 = vld [vmem:[%s4049_s1 + $0xe8] sm:$0xff] }
   0x5   :  { %1770 = vmatpush.bf16.msra.mxu3 %v3122_v3  ;;  %v3095_v12 = vld [vmem:[%s4049_s1 + $0x20] sm:$0xff]  ;;  %v3094_v16 = vld [vmem:[%s4049_s1 + $0x18] sm:$0xff]  ;;  %v3093_v20 = vld [vmem:[%s4049_s1 + $0x10] sm:$0xff] }
   0x6   :  { %1732 = vmatpush.bf16.msra.mxu0 %v3097_v4  ;;  %v3111_v13 = vld [vmem:[%s4049_s1 + $0xa0] sm:$0xff]  ;;  %v3110_v17 = vld [vmem:[%s4049_s1 + $0x98] sm:$0xff]  ;;  %v3109_v21 = vld [vmem:[%s4049_s1 + $0x90] sm:$0xff] }
   0x7   :  { %1758 = vmatpush.bf16.msra.mxu2 %v3113_v5  ;;  %v3103_v14 = vld [vmem:[%s4049_s1 + $0x60] sm:$0xff]  ;;  %v3102_v18 = vld [vmem:[%s4049_s1 + $0x58] sm:$0xff]  ;;  %v3101_v22 = vld [vmem:[%s4049_s1 + $0x50] sm:$0xff] }
   0x8   :  { %1745 = vmatpush.bf16.msra.mxu1 %v3105_v6  ;;  %v3119_v15 = vld [vmem:[%s4049_s1 + $0xe0] sm:$0xff]  ;;  %v3118_v19 = vld [vmem:[%s4049_s1 + $0xd8] sm:$0xff]  ;;  %v3117_v23 = vld [vmem:[%s4049_s1 + $0xd0] sm:$0xff] }
   0x9   :  { %1771 = vmatpush.bf16.msra.mxu3 %v3121_v7  ;;  %v3092_v24 = vld [vmem:[%s4049_s1 + $0x8] sm:$0xff]  ;;  %v26_v29 = vld [vmem:[%s4050_s0] sm:$0xff]  ;;  %v3130_v34 = vld [vmem:[%s4049_s1 + $0x138] sm:$0xff] }
   0xa   :  { %1733 = vmatpush.bf16.msra.mxu0 %v3096_v8  ;;  %v3108_v25 = vld [vmem:[%s4049_s1 + $0x88] sm:$0xff]  ;;  %v3091_v30 = vld [vmem:[%s4049_s1] sm:$0xff]  ;;  %v456_v33 = vunpack.c.l.b16 %v26_v29  ;;  %v3146_v35 = vld [vmem:[%s4049_s1 + $0x1b8] sm:$0xff]  ;;  %v457_v39 = vunpack.c.h.b16 %v26_v29 }
   0xb   :  { %1759 = vmatpush.bf16.msra.mxu2 %v3112_v9  ;;  %v3100_v26 = vld [vmem:[%s4049_s1 + $0x48] sm:$0xff]  ;;  %v3107_v31 = vld [vmem:[%s4049_s1 + $0x80] sm:$0xff]  ;;  %v3138_v40 = vld [vmem:[%s4049_s1 + $0x178] sm:$0xff] }
   0xc   :  { %1746 = vmatpush.bf16.msra.mxu1 %v3104_v10  ;;  %v3116_v27 = vld [vmem:[%s4049_s1 + $0xc8] sm:$0xff]  ;;  %v3099_v36 = vld [vmem:[%s4049_s1 + $0x40] sm:$0xff]  ;;  %v3154_v41 = vld [vmem:[%s4049_s1 + $0x1f8] sm:$0xff]  ;;  %v481_v43 = vpack.c.b16 %v456_v33, %v456_v33  ;;  %v482_v47 = vpack.c.b16 %v457_v39, %v457_v39 }
   0xd   :  { %1772 = vmatpush.bf16.msra.mxu3 %v3120_v11  ;;  %v27_v28 = vld [vmem:[%s4050_s0 + $0x8] sm:$0xff]  ;;  %v3115_v37 = vld [vmem:[%s4049_s1 + $0xc0] sm:$0xff]  ;;  %v3129_v44 = vld [vmem:[%s4049_s1 + $0x130] sm:$0xff] }
   0xe   :  { %1734 = vmatpush.bf16.msra.mxu0 %v3095_v12  ;;  %v458_v32 = vunpack.c.l.b16 %v27_v28  ;;  %v459_v38 = vunpack.c.h.b16 %v27_v28  ;;  %v3145_v45 = vld [vmem:[%s4049_s1 + $0x1b0] sm:$0xff]  ;;  %v3128_v50 = vld [vmem:[%s4049_s1 + $0x128] sm:$0xff]  ;;  %v3127_v54 = vld [vmem:[%s4049_s1 + $0x120] sm:$0xff] }
   0xf   :  { %1760 = vmatpush.bf16.msra.mxu2 %v3111_v13  ;;  %v3137_v48 = vld [vmem:[%s4049_s1 + $0x170] sm:$0xff]  ;;  %v3144_v51 = vld [vmem:[%s4049_s1 + $0x1a8] sm:$0xff]  ;;  %v3143_v55 = vld [vmem:[%s4049_s1 + $0x1a0] sm:$0xff] }
  0x10   :  { %1747 = vmatpush.bf16.msra.mxu1 %v3103_v14  ;;  %v483_v42 = vpack.c.b16 %v458_v32, %v458_v32  ;;  %v484_v46 = vpack.c.b16 %v459_v38, %v459_v38  ;;  %v3153_v49 = vld [vmem:[%s4049_s1 + $0x1f0] sm:$0xff]  ;;  %v3136_v52 = vld [vmem:[%s4049_s1 + $0x168] sm:$0xff]  ;;  %v3135_v56 = vld [vmem:[%s4049_s1 + $0x160] sm:$0xff] }
  0x11   :  { %1773 = vmatpush.bf16.msra.mxu3 %v3119_v15  ;;  %v3152_v53 = vld [vmem:[%s4049_s1 + $0x1e8] sm:$0xff]  ;;  %v3151_v57 = vld [vmem:[%s4049_s1 + $0x1e0] sm:$0xff]  ;;  %v3126_v58 = vld [vmem:[%s4049_s1 + $0x118] sm:$0xff] }
  0x12   :  { %1735 = vmatpush.bf16.msra.mxu0 %v3094_v16  ;;  %v3142_v59 = vld [vmem:[%s4049_s1 + $0x198] sm:$0xff]  ;;  %v3125_v62 = vld [vmem:[%s4049_s1 + $0x110] sm:$0xff]  ;;  %v3124_v2 = vld [vmem:[%s4049_s1 + $0x108] sm:$0xff] }
  0x13   :  { %1761 = vmatpush.bf16.msra.mxu2 %v3110_v17  ;;  %v3134_v60 = vld [vmem:[%s4049_s1 + $0x158] sm:$0xff]  ;;  %v3141_v63 = vld [vmem:[%s4049_s1 + $0x190] sm:$0xff]  ;;  %v3140_v3 = vld [vmem:[%s4049_s1 + $0x188] sm:$0xff] }
  0x14   :  { %1748 = vmatpush.bf16.msra.mxu1 %v3102_v18  ;;  %v3150_v61 = vld [vmem:[%s4049_s1 + $0x1d8] sm:$0xff]  ;;  %v3133_v0 = vld [vmem:[%s4049_s1 + $0x150] sm:$0xff]  ;;  %v3132_v6 = vld [vmem:[%s4049_s1 + $0x148] sm:$0xff] }
  0x15   :  { %1774 = vmatpush.bf16.msra.mxu3 %v3118_v19  ;;  %v3149_v1 = vld [vmem:[%s4049_s1 + $0x1d0] sm:$0xff]  ;;  %v29_v4 = vld [vmem:[%s4050_s0 + $0x18] sm:$0xff]  ;;  %v3148_v7 = vld [vmem:[%s4049_s1 + $0x1c8] sm:$0xff] }
  0x16   :  { %1736 = vmatpush.bf16.msra.mxu0 %v3093_v20  ;;  %v28_v5 = vld [vmem:[%s4050_s0 + $0x10] sm:$0xff]  ;;  %v3123_v8 = vld [vmem:[%s4049_s1 + $0x100] sm:$0xff]  ;;  %v462_v10 = vunpack.c.l.b16 %v29_v4  ;;  %v3162_v12 = vld [vmem:[%s4049_s1 + $0x238] sm:$0xff]  ;;  %v463_v16 = vunpack.c.h.b16 %v29_v4 }
  0x17   :  { %1762 = vmatpush.bf16.msra.mxu2 %v3109_v21  ;;  %v3139_v9 = vld [vmem:[%s4049_s1 + $0x180] sm:$0xff]  ;;  %v460_v11 = vunpack.c.l.b16 %v28_v5  ;;  %v3178_v13 = vld [vmem:[%s4049_s1 + $0x2b8] sm:$0xff]  ;;  %v461_v17 = vunpack.c.h.b16 %v28_v5  ;;  %v3160_v28 = vld [vmem:[%s4049_s1 + $0x228] sm:$0xff] }
  0x18   :  { %1749 = vmatpush.bf16.msra.mxu1 %v3101_v22  ;;  %v3131_v14 = vld [vmem:[%s4049_s1 + $0x140] sm:$0xff]  ;;  %v3170_v18 = vld [vmem:[%s4049_s1 + $0x278] sm:$0xff]  ;;  %v487_v20 = vpack.c.b16 %v462_v10, %v462_v10  ;;  %v3161_v22 = vld [vmem:[%s4049_s1 + $0x230] sm:$0xff] }
  0x19   :  { %1775 = vmatpush.bf16.msra.mxu3 %v3117_v23  ;;  %v3147_v15 = vld [vmem:[%s4049_s1 + $0x1c0] sm:$0xff]  ;;  %v3186_v19 = vld [vmem:[%s4049_s1 + $0x2f8] sm:$0xff]  ;;  %v485_v21 = vpack.c.b16 %v460_v11, %v460_v11  ;;  %v3177_v23 = vld [vmem:[%s4049_s1 + $0x2b0] sm:$0xff] }
  0x1a   :  { %1737 = vmatpush.bf16.msra.mxu0 %v3092_v24  ;;  %v488_v24 = vpack.c.b16 %v463_v16, %v463_v16  ;;  %v3176_v29 = vld [vmem:[%s4049_s1 + $0x2a8] sm:$0xff]  ;;  %v3159_v32 = vld [vmem:[%s4049_s1 + $0x220] sm:$0xff]  ;;  %v3166_v38 = vld [vmem:[%s4049_s1 + $0x258] sm:$0xff] }
  0x1b   :  { %1763 = vmatpush.bf16.msra.mxu2 %v3108_v25  ;;  %v486_v25 = vpack.c.b16 %v461_v17, %v461_v17  ;;  %v3175_v33 = vld [vmem:[%s4049_s1 + $0x2a0] sm:$0xff]  ;;  %v3182_v39 = vld [vmem:[%s4049_s1 + $0x2d8] sm:$0xff]  ;;  %v3201_v4 = vld [vmem:[%s4049_s1 + $0x370] sm:$0xff] }
  0x1c   :  { %1750 = vmatpush.bf16.msra.mxu1 %v3100_v26  ;;  %v3169_v26 = vld [vmem:[%s4049_s1 + $0x270] sm:$0xff]  ;;  %v3191_v10 = vld [vmem:[%s4049_s1 + $0x320] sm:$0xff]  ;;  %v3198_v16 = vld [vmem:[%s4049_s1 + $0x358] sm:$0xff] }
  0x1d   :  { %1776 = vmatpush.bf16.msra.mxu3 %v3116_v27  ;;  %v3185_v27 = vld [vmem:[%s4049_s1 + $0x2f0] sm:$0xff]  ;;  %v3207_v11 = vld [vmem:[%s4049_s1 + $0x3a0] sm:$0xff]  ;;  %v3214_v17 = vld [vmem:[%s4049_s1 + $0x3d8] sm:$0xff] }
  0x1e   :  { %1738 = vmatpush.bf16.msra.mxu0 %v3091_v30  ;;  %v3168_v30 = vld [vmem:[%s4049_s1 + $0x268] sm:$0xff]  ;;  %v3217_v5 = vld [vmem:[%s4049_s1 + $0x3f0] sm:$0xff] }
  0x1f   :  { %1764 = vmatpush.bf16.msra.mxu2 %v3107_v31  ;;  %v3184_v31 = vld [vmem:[%s4049_s1 + $0x2e8] sm:$0xff] }
  0x20   :  { %1751 = vmatpush.bf16.msra.mxu1 %v3099_v36  ;;  %v3158_v36 = vld [vmem:[%s4049_s1 + $0x218] sm:$0xff] }
  0x21   :  { %1777 = vmatpush.bf16.msra.mxu3 %v3115_v37  ;;  %1739 = vmatmul.bf16.vlgmr.msra.gmra.mxu0 %v481_v43  ;;  %v3174_v37 = vld [vmem:[%s4049_s1 + $0x298] sm:$0xff]  ;;  %v3181_v43 = vld [vmem:[%s4049_s1 + $0x2d0] sm:$0xff] }
  0x22   :  { %1783 = vmatpush.bf16.msrb.mxu0 %v3130_v34  ;;  %1765 = vmatmul.bf16.vlgmr.msra.gmra.mxu2 %v483_v42  ;;  %v3167_v34 = vld [vmem:[%s4049_s1 + $0x260] sm:$0xff]  ;;  %v3165_v42 = vld [vmem:[%s4049_s1 + $0x250] sm:$0xff] }
  0x23   :  { %1809 = vmatpush.bf16.msrb.mxu2 %v3146_v35  ;;  %1752 = vmatmul.bf16.vlgmr.msra.gmra.mxu1 %v482_v47  ;;  %v3183_v35 = vld [vmem:[%s4049_s1 + $0x2e0] sm:$0xff]  ;;  %v31_v47 = vld [vmem:[%s4050_s0 + $0x28] sm:$0xff] }
  0x24   :  { %1796 = vmatpush.bf16.msrb.mxu1 %v3138_v40  ;;  %1778 = vmatmul.bf16.vlgmr.msra.gmra.mxu3 %v484_v46  ;;  %v3157_v40 = vld [vmem:[%s4049_s1 + $0x210] sm:$0xff]  ;;  %v30_v46 = vld [vmem:[%s4050_s0 + $0x20] sm:$0xff] }
  0x25   :  { %1822 = vmatpush.bf16.msrb.mxu3 %v3154_v41  ;;  %v3173_v41 = vld [vmem:[%s4049_s1 + $0x290] sm:$0xff] }
  0x26   :  { %1784 = vmatpush.bf16.msrb.mxu0 %v3129_v44  ;;  %v3156_v44 = vld [vmem:[%s4049_s1 + $0x208] sm:$0xff] }
  0x27   :  { %1810 = vmatpush.bf16.msrb.mxu2 %v3145_v45  ;;  %v3172_v45 = vld [vmem:[%s4049_s1 + $0x288] sm:$0xff] }
  0x28   :  { %1797 = vmatpush.bf16.msrb.mxu1 %v3137_v48  ;;  %v3164_v48 = vld [vmem:[%s4049_s1 + $0x248] sm:$0xff] }
  0x29   :  { %1823 = vmatpush.bf16.msrb.mxu3 %v3153_v49  ;;  %v3180_v49 = vld [vmem:[%s4049_s1 + $0x2c8] sm:$0xff] }
  0x2a   :  { %1785 = vmatpush.bf16.msrb.mxu0 %v3128_v50  ;;  %v464_v50 = vunpack.c.l.b16 %v30_v46 }
  0x2b   :  { %1811 = vmatpush.bf16.msrb.mxu2 %v3144_v51  ;;  %v466_v51 = vunpack.c.l.b16 %v31_v47 }
  0x2c   :  { %1798 = vmatpush.bf16.msrb.mxu1 %v3136_v52  ;;  %v3155_v52 = vld [vmem:[%s4049_s1 + $0x200] sm:$0xff] }
  0x2d   :  { %1824 = vmatpush.bf16.msrb.mxu3 %v3152_v53  ;;  %v3171_v53 = vld [vmem:[%s4049_s1 + $0x280] sm:$0xff] }
  0x2e   :  { %1786 = vmatpush.bf16.msrb.mxu0 %v3127_v54  ;;  %v3194_v54 = vld [vmem:[%s4049_s1 + $0x338] sm:$0xff] }
  0x2f   :  { %1812 = vmatpush.bf16.msrb.mxu2 %v3143_v55  ;;  %v3210_v55 = vld [vmem:[%s4049_s1 + $0x3b8] sm:$0xff] }
  0x30   :  { %1799 = vmatpush.bf16.msrb.mxu1 %v3135_v56  ;;  %v465_v56 = vunpack.c.h.b16 %v30_v46  ;;  %v3233_v46 = vld [vmem:[%s4049_s1 + $0x470] sm:$0xff] }
  0x31   :  { %1825 = vmatpush.bf16.msrb.mxu3 %v3151_v57  ;;  %v467_v57 = vunpack.c.h.b16 %v31_v47  ;;  %v3249_v47 = vld [vmem:[%s4049_s1 + $0x4f0] sm:$0xff] }
  0x32   :  { %1787 = vmatpush.bf16.msrb.mxu0 %v3126_v58  ;;  %v3163_v58 = vld [vmem:[%s4049_s1 + $0x240] sm:$0xff] }
  0x33   :  { %1813 = vmatpush.bf16.msrb.mxu2 %v3142_v59  ;;  %v3179_v59 = vld [vmem:[%s4049_s1 + $0x2c0] sm:$0xff] }
  0x34   :  { %1800 = vmatpush.bf16.msrb.mxu1 %v3134_v60  ;;  %v489_v60 = vpack.c.b16 %v464_v50, %v464_v50  ;;  %v3232_v50 = vld [vmem:[%s4049_s1 + $0x468] sm:$0xff] }
  0x35   :  { %1826 = vmatpush.bf16.msrb.mxu3 %v3150_v61  ;;  %v491_v61 = vpack.c.b16 %v466_v51, %v466_v51  ;;  %v3248_v51 = vld [vmem:[%s4049_s1 + $0x4e8] sm:$0xff] }
  0x36   :  { %1788 = vmatpush.bf16.msrb.mxu0 %v3125_v62  ;;  %v3202_v62 = vld [vmem:[%s4049_s1 + $0x378] sm:$0xff] }
  0x37   :  { %1814 = vmatpush.bf16.msrb.mxu2 %v3141_v63  ;;  %v3218_v63 = vld [vmem:[%s4049_s1 + $0x3f8] sm:$0xff] }
  0x38   :  { %1801 = vmatpush.bf16.msrb.mxu1 %v3133_v0  ;;  %v490_v0 = vpack.c.b16 %v465_v56, %v465_v56  ;;  %v3222_v56 = vld [vmem:[%s4049_s1 + $0x418] sm:$0xff] }
  0x39   :  { %1827 = vmatpush.bf16.msrb.mxu3 %v3149_v1  ;;  %v492_v1 = vpack.c.b16 %v467_v57, %v467_v57  ;;  %v3238_v57 = vld [vmem:[%s4049_s1 + $0x498] sm:$0xff] }
  0x3a   :  { %1789 = vmatpush.bf16.msrb.mxu0 %v3124_v2  ;;  %v3193_v2 = vld [vmem:[%s4049_s1 + $0x330] sm:$0xff] }
  0x3b   :  { %1815 = vmatpush.bf16.msrb.mxu2 %v3140_v3  ;;  %v3209_v3 = vld [vmem:[%s4049_s1 + $0x3b0] sm:$0xff] }
  0x3c   :  { %1802 = vmatpush.bf16.msrb.mxu1 %v3132_v6  ;;  %v3192_v6 = vld [vmem:[%s4049_s1 + $0x328] sm:$0xff] }
  0x3d   :  { %1828 = vmatpush.bf16.msrb.mxu3 %v3148_v7  ;;  %v3208_v7 = vld [vmem:[%s4049_s1 + $0x3a8] sm:$0xff] }
  0x3e   :  { %1790 = vmatpush.bf16.msrb.mxu0 %v3123_v8  ;;  %v3200_v8 = vld [vmem:[%s4049_s1 + $0x368] sm:$0xff] }
  0x3f   :  { %1816 = vmatpush.bf16.msrb.mxu2 %v3139_v9  ;;  %v3216_v9 = vld [vmem:[%s4049_s1 + $0x3e8] sm:$0xff] }
  0x40   :  { %1803 = vmatpush.bf16.msrb.mxu1 %v3131_v14  ;;  %v3190_v14 = vld [vmem:[%s4049_s1 + $0x318] sm:$0xff] }
  0x41   :  { %1829 = vmatpush.bf16.msrb.mxu3 %v3147_v15  ;;  %1791 = vmatmul.bf16.vlgmr.msrb.gmra.mxu0 %v485_v21  ;;  %v3206_v15 = vld [vmem:[%s4049_s1 + $0x398] sm:$0xff]  ;;  %v3213_v21 = vld [vmem:[%s4049_s1 + $0x3d0] sm:$0xff] }
  0x42   :  { %1835 = vmatpush.bf16.msra.mxu0 %v3162_v12  ;;  %1817 = vmatmul.bf16.vlgmr.msrb.gmra.mxu2 %v487_v20  ;;  %v3199_v12 = vld [vmem:[%s4049_s1 + $0x360] sm:$0xff]  ;;  %v3197_v20 = vld [vmem:[%s4049_s1 + $0x350] sm:$0xff] }
  0x43   :  { %1861 = vmatpush.bf16.msra.mxu2 %v3178_v13  ;;  %1804 = vmatmul.bf16.vlgmr.msrb.gmra.mxu1 %v486_v25  ;;  %v3215_v13 = vld [vmem:[%s4049_s1 + $0x3e0] sm:$0xff]  ;;  %v33_v25 = vld [vmem:[%s4050_s0 + $0x38] sm:$0xff] }
  0x44   :  { %1848 = vmatpush.bf16.msra.mxu1 %v3170_v18  ;;  %1830 = vmatmul.bf16.vlgmr.msrb.gmra.mxu3 %v488_v24  ;;  %v3189_v18 = vld [vmem:[%s4049_s1 + $0x310] sm:$0xff] }
  0x45   :  { %1874 = vmatpush.bf16.msra.mxu3 %v3186_v19  ;;  %v3205_v19 = vld [vmem:[%s4049_s1 + $0x390] sm:$0xff] }
  0x46   :  { %1836 = vmatpush.bf16.msra.mxu0 %v3161_v22  ;;  %v3188_v22 = vld [vmem:[%s4049_s1 + $0x308] sm:$0xff]  ;;  %v32_v24 = vld [vmem:[%s4050_s0 + $0x30] sm:$0xff] }
  0x47   :  { %1862 = vmatpush.bf16.msra.mxu2 %v3177_v23  ;;  %v3204_v23 = vld [vmem:[%s4049_s1 + $0x388] sm:$0xff] }
  0x48   :  { %1849 = vmatpush.bf16.msra.mxu1 %v3169_v26  ;;  %v3196_v26 = vld [vmem:[%s4049_s1 + $0x348] sm:$0xff] }
  0x49   :  { %1875 = vmatpush.bf16.msra.mxu3 %v3185_v27  ;;  %v3212_v27 = vld [vmem:[%s4049_s1 + $0x3c8] sm:$0xff] }
  0x4a   :  { %1837 = vmatpush.bf16.msra.mxu0 %v3160_v28  ;;  %v468_v28 = vunpack.c.l.b16 %v32_v24 }
  0x4b   :  { %1863 = vmatpush.bf16.msra.mxu2 %v3176_v29  ;;  %v470_v29 = vunpack.c.l.b16 %v33_v25 }
  0x4c   :  { %1850 = vmatpush.bf16.msra.mxu1 %v3168_v30  ;;  %v3187_v30 = vld [vmem:[%s4049_s1 + $0x300] sm:$0xff] }
  0x4d   :  { %1876 = vmatpush.bf16.msra.mxu3 %v3184_v31  ;;  %v3203_v31 = vld [vmem:[%s4049_s1 + $0x380] sm:$0xff] }
  0x4e   :  { %1838 = vmatpush.bf16.msra.mxu0 %v3159_v32  ;;  %v3226_v32 = vld [vmem:[%s4049_s1 + $0x438] sm:$0xff] }
  0x4f   :  { %1864 = vmatpush.bf16.msra.mxu2 %v3175_v33  ;;  %v3242_v33 = vld [vmem:[%s4049_s1 + $0x4b8] sm:$0xff] }
  0x50   :  { %1851 = vmatpush.bf16.msra.mxu1 %v3167_v34  ;;  %v469_v34 = vunpack.c.h.b16 %v32_v24  ;;  %v3265_v24 = vld [vmem:[%s4049_s1 + $0x570] sm:$0xff] }
  0x51   :  { %1877 = vmatpush.bf16.msra.mxu3 %v3183_v35  ;;  %v471_v35 = vunpack.c.h.b16 %v33_v25  ;;  %v3281_v25 = vld [vmem:[%s4049_s1 + $0x5f0] sm:$0xff] }
  0x52   :  { %1839 = vmatpush.bf16.msra.mxu0 %v3158_v36  ;;  %v3195_v36 = vld [vmem:[%s4049_s1 + $0x340] sm:$0xff] }
  0x53   :  { %1865 = vmatpush.bf16.msra.mxu2 %v3174_v37  ;;  %v3211_v37 = vld [vmem:[%s4049_s1 + $0x3c0] sm:$0xff] }
  0x54   :  { %1852 = vmatpush.bf16.msra.mxu1 %v3166_v38  ;;  %v493_v38 = vpack.c.b16 %v468_v28, %v468_v28  ;;  %v3264_v28 = vld [vmem:[%s4049_s1 + $0x568] sm:$0xff] }
  0x55   :  { %1878 = vmatpush.bf16.msra.mxu3 %v3182_v39  ;;  %v495_v39 = vpack.c.b16 %v470_v29, %v470_v29  ;;  %v3280_v29 = vld [vmem:[%s4049_s1 + $0x5e8] sm:$0xff] }
  0x56   :  { %1840 = vmatpush.bf16.msra.mxu0 %v3157_v40  ;;  %v3234_v40 = vld [vmem:[%s4049_s1 + $0x478] sm:$0xff] }
  0x57   :  { %1866 = vmatpush.bf16.msra.mxu2 %v3173_v41  ;;  %v3250_v41 = vld [vmem:[%s4049_s1 + $0x4f8] sm:$0xff] }
  0x58   :  { %1853 = vmatpush.bf16.msra.mxu1 %v3165_v42  ;;  %v494_v42 = vpack.c.b16 %v469_v34, %v469_v34  ;;  %v3263_v34 = vld [vmem:[%s4049_s1 + $0x560] sm:$0xff] }
  0x59   :  { %1879 = vmatpush.bf16.msra.mxu3 %v3181_v43  ;;  %v496_v43 = vpack.c.b16 %v471_v35, %v471_v35  ;;  %v3279_v35 = vld [vmem:[%s4049_s1 + $0x5e0] sm:$0xff] }
  0x5a   :  { %1841 = vmatpush.bf16.msra.mxu0 %v3156_v44  ;;  %v3225_v44 = vld [vmem:[%s4049_s1 + $0x430] sm:$0xff] }
  0x5b   :  { %1867 = vmatpush.bf16.msra.mxu2 %v3172_v45  ;;  %v3241_v45 = vld [vmem:[%s4049_s1 + $0x4b0] sm:$0xff] }
  0x5c   :  { %1854 = vmatpush.bf16.msra.mxu1 %v3164_v48  ;;  %v3224_v48 = vld [vmem:[%s4049_s1 + $0x428] sm:$0xff] }
  0x5d   :  { %1880 = vmatpush.bf16.msra.mxu3 %v3180_v49  ;;  %v3240_v49 = vld [vmem:[%s4049_s1 + $0x4a8] sm:$0xff] }
  0x5e   :  { %1842 = vmatpush.bf16.msra.mxu0 %v3155_v52  ;;  %v3223_v52 = vld [vmem:[%s4049_s1 + $0x420] sm:$0xff] }
  0x5f   :  { %1868 = vmatpush.bf16.msra.mxu2 %v3171_v53  ;;  %v3239_v53 = vld [vmem:[%s4049_s1 + $0x4a0] sm:$0xff] }
  0x60   :  { %1855 = vmatpush.bf16.msra.mxu1 %v3163_v58  ;;  %v3230_v58 = vld [vmem:[%s4049_s1 + $0x458] sm:$0xff] }
  0x61   :  { %1881 = vmatpush.bf16.msra.mxu3 %v3179_v59  ;;  %1843 = vmatmul.bf16.vlgmr.msra.gmra.mxu0 %v489_v60  ;;  %v3246_v59 = vld [vmem:[%s4049_s1 + $0x4d8] sm:$0xff]  ;;  %v3221_v60 = vld [vmem:[%s4049_s1 + $0x410] sm:$0xff] }
  0x62   :  { %1887 = vmatpush.bf16.msrb.mxu0 %v3194_v54  ;;  %1869 = vmatmul.bf16.vlgmr.msra.gmra.mxu2 %v491_v61  ;;  %v3231_v54 = vld [vmem:[%s4049_s1 + $0x460] sm:$0xff]  ;;  %v3237_v61 = vld [vmem:[%s4049_s1 + $0x490] sm:$0xff] }
  0x63   :  { %1913 = vmatpush.bf16.msrb.mxu2 %v3210_v55  ;;  %1856 = vmatmul.bf16.vlgmr.msra.gmra.mxu1 %v490_v0  ;;  %v3247_v55 = vld [vmem:[%s4049_s1 + $0x4e0] sm:$0xff]  ;;  %v3220_v0 = vld [vmem:[%s4049_s1 + $0x408] sm:$0xff] }
  0x64   :  { %1900 = vmatpush.bf16.msrb.mxu1 %v3202_v62  ;;  %1882 = vmatmul.bf16.vlgmr.msra.gmra.mxu3 %v492_v1  ;;  %v3229_v62 = vld [vmem:[%s4049_s1 + $0x450] sm:$0xff]  ;;  %v3236_v1 = vld [vmem:[%s4049_s1 + $0x488] sm:$0xff] }
  0x65   :  { %1926 = vmatpush.bf16.msrb.mxu3 %v3218_v63  ;;  %v3245_v63 = vld [vmem:[%s4049_s1 + $0x4d0] sm:$0xff] }
  0x66   :  { %1888 = vmatpush.bf16.msrb.mxu0 %v3193_v2  ;;  %v34_v2 = vld [vmem:[%s4050_s0 + $0x40] sm:$0xff] }
  0x67   :  { %1914 = vmatpush.bf16.msrb.mxu2 %v3209_v3  ;;  %v35_v3 = vld [vmem:[%s4050_s0 + $0x48] sm:$0xff] }
  0x68   :  { %1901 = vmatpush.bf16.msrb.mxu1 %v3201_v4  ;;  %v3228_v4 = vld [vmem:[%s4049_s1 + $0x448] sm:$0xff] }
  0x69   :  { %1927 = vmatpush.bf16.msrb.mxu3 %v3217_v5  ;;  %v3244_v5 = vld [vmem:[%s4049_s1 + $0x4c8] sm:$0xff] }
  0x6a   :  { %1889 = vmatpush.bf16.msrb.mxu0 %v3192_v6  ;;  %v472_v6 = vunpack.c.l.b16 %v34_v2 }
  0x6b   :  { %1915 = vmatpush.bf16.msrb.mxu2 %v3208_v7  ;;  %v474_v7 = vunpack.c.l.b16 %v35_v3 }
  0x6c   :  { %1902 = vmatpush.bf16.msrb.mxu1 %v3200_v8  ;;  %v3219_v8 = vld [vmem:[%s4049_s1 + $0x400] sm:$0xff] }
  0x6d   :  { %1928 = vmatpush.bf16.msrb.mxu3 %v3216_v9  ;;  %v3235_v9 = vld [vmem:[%s4049_s1 + $0x480] sm:$0xff] }
  0x6e   :  { %1890 = vmatpush.bf16.msrb.mxu0 %v3191_v10  ;;  %v3258_v10 = vld [vmem:[%s4049_s1 + $0x538] sm:$0xff] }
  0x6f   :  { %1916 = vmatpush.bf16.msrb.mxu2 %v3207_v11  ;;  %v3274_v11 = vld [vmem:[%s4049_s1 + $0x5b8] sm:$0xff] }
  0x70   :  { %1903 = vmatpush.bf16.msrb.mxu1 %v3199_v12  ;;  %v473_v12 = vunpack.c.h.b16 %v34_v2 }
  0x71   :  { %1929 = vmatpush.bf16.msrb.mxu3 %v3215_v13  ;;  %v475_v13 = vunpack.c.h.b16 %v35_v3 }
  0x72   :  { %1891 = vmatpush.bf16.msrb.mxu0 %v3190_v14  ;;  %v3227_v14 = vld [vmem:[%s4049_s1 + $0x440] sm:$0xff] }
  0x73   :  { %1917 = vmatpush.bf16.msrb.mxu2 %v3206_v15  ;;  %v3243_v15 = vld [vmem:[%s4049_s1 + $0x4c0] sm:$0xff] }
  0x74   :  { %1904 = vmatpush.bf16.msrb.mxu1 %v3198_v16  ;;  %v497_v16 = vpack.c.b16 %v472_v6, %v472_v6 }
  0x75   :  { %1930 = vmatpush.bf16.msrb.mxu3 %v3214_v17  ;;  %v499_v17 = vpack.c.b16 %v474_v7, %v474_v7 }
  0x76   :  { %1892 = vmatpush.bf16.msrb.mxu0 %v3189_v18  ;;  %v3266_v18 = vld [vmem:[%s4049_s1 + $0x578] sm:$0xff] }
  0x77   :  { %1918 = vmatpush.bf16.msrb.mxu2 %v3205_v19  ;;  %v3282_v19 = vld [vmem:[%s4049_s1 + $0x5f8] sm:$0xff] }
  0x78   :  { %1905 = vmatpush.bf16.msrb.mxu1 %v3197_v20  ;;  %v498_v20 = vpack.c.b16 %v473_v12, %v473_v12  ;;  %v3287_v12 = vld [vmem:[%s4049_s1 + $0x620] sm:$0xff] }
  0x79   :  { %1931 = vmatpush.bf16.msrb.mxu3 %v3213_v21  ;;  %v500_v21 = vpack.c.b16 %v475_v13, %v475_v13 }
  0x7a   :  { %1893 = vmatpush.bf16.msrb.mxu0 %v3188_v22  ;;  %v3257_v22 = vld [vmem:[%s4049_s1 + $0x530] sm:$0xff] }
  0x7b   :  { %1919 = vmatpush.bf16.msrb.mxu2 %v3204_v23  ;;  %v3273_v23 = vld [vmem:[%s4049_s1 + $0x5b0] sm:$0xff] }
  0x7c   :  { %1906 = vmatpush.bf16.msrb.mxu1 %v3196_v26  ;;  %v3256_v26 = vld [vmem:[%s4049_s1 + $0x528] sm:$0xff] }
  0x7d   :  { %1932 = vmatpush.bf16.msrb.mxu3 %v3212_v27  ;;  %v3272_v27 = vld [vmem:[%s4049_s1 + $0x5a8] sm:$0xff] }
  0x7e   :  { %1894 = vmatpush.bf16.msrb.mxu0 %v3187_v30  ;;  %v3307_v30 = vld [vmem:[%s4051_s2] ss:$0 sm:$0xff] }
  0x7f   :  { %1920 = vmatpush.bf16.msrb.mxu2 %v3203_v31  ;;  %v3255_v31 = vld [vmem:[%s4049_s1 + $0x520] sm:$0xff] }
  0x80   :  { %1907 = vmatpush.bf16.msrb.mxu1 %v3195_v36 }
  0x81   :  { %1933 = vmatpush.bf16.msrb.mxu3 %v3211_v37  ;;  %1895 = vmatmul.bf16.vlgmr.msrb.gmra.mxu0 %v493_v38  ;;  %v3254_v38 = vld [vmem:[%s4049_s1 + $0x518] sm:$0xff] }
  0x82   :  { %1939 = vmatpush.bf16.msra.mxu0 %v3226_v32  ;;  %1921 = vmatmul.bf16.vlgmr.msrb.gmra.mxu2 %v495_v39  ;;  %v3271_v32 = vld [vmem:[%s4049_s1 + $0x5a0] sm:$0xff]  ;;  %v3270_v39 = vld [vmem:[%s4049_s1 + $0x598] sm:$0xff] }
  0x83   :  { %1965 = vmatpush.bf16.msra.mxu2 %v3242_v33  ;;  %1908 = vmatmul.bf16.vlgmr.msrb.gmra.mxu1 %v494_v42  ;;  %v3278_v42 = vld [vmem:[%s4049_s1 + $0x5d8] sm:$0xff] }
  0x84   :  { %1952 = vmatpush.bf16.msra.mxu1 %v3234_v40  ;;  %1934 = vmatmul.bf16.vlgmr.msrb.gmra.mxu3 %v496_v43 }
  0x85   :  { %1978 = vmatpush.bf16.msra.mxu3 %v3250_v41  ;;  %v3262_v41 = vld [vmem:[%s4049_s1 + $0x558] sm:$0xff] }
  0x86   :  { %1940 = vmatpush.bf16.msra.mxu0 %v3225_v44  ;;  %v3253_v44 = vld [vmem:[%s4049_s1 + $0x510] sm:$0xff] }
  0x87   :  { %1966 = vmatpush.bf16.msra.mxu2 %v3241_v45  ;;  %v3269_v45 = vld [vmem:[%s4049_s1 + $0x590] sm:$0xff] }
  0x88   :  { %1953 = vmatpush.bf16.msra.mxu1 %v3233_v46 }
  0x89   :  { %1979 = vmatpush.bf16.msra.mxu3 %v3249_v47 }
  0x8a   :  { %1941 = vmatpush.bf16.msra.mxu0 %v3224_v48 }
  0x8b   :  { %1967 = vmatpush.bf16.msra.mxu2 %v3240_v49  ;;  %v3261_v49 = vld [vmem:[%s4049_s1 + $0x550] sm:$0xff] }
  0x8c   :  { %1954 = vmatpush.bf16.msra.mxu1 %v3232_v50  ;;  %v3277_v50 = vld [vmem:[%s4049_s1 + $0x5d0] sm:$0xff] }
  0x8d   :  { %1980 = vmatpush.bf16.msra.mxu3 %v3248_v51 }
  0x8e   :  { %1942 = vmatpush.bf16.msra.mxu0 %v3223_v52  ;;  %v3252_v52 = vld [vmem:[%s4049_s1 + $0x508] sm:$0xff] }
  0x8f   :  { %1968 = vmatpush.bf16.msra.mxu2 %v3239_v53 }
  0x90   :  { %1955 = vmatpush.bf16.msra.mxu1 %v3231_v54  ;;  %v3268_v54 = vld [vmem:[%s4049_s1 + $0x588] sm:$0xff] }
  0x91   :  { %1981 = vmatpush.bf16.msra.mxu3 %v3247_v55  ;;  %v36_v55 = vld [vmem:[%s4050_s0 + $0x50] sm:$0xff] }
  0x92   :  { %1943 = vmatpush.bf16.msra.mxu0 %v3222_v56  ;;  %v37_v56 = vld [vmem:[%s4050_s0 + $0x58] sm:$0xff] }
  0x93   :  { %1969 = vmatpush.bf16.msra.mxu2 %v3238_v57  ;;  %v3260_v57 = vld [vmem:[%s4049_s1 + $0x548] sm:$0xff]  ;;  %v479_v2 = vunpack.c.h.b16 %v37_v56 }
  0x94   :  { %1956 = vmatpush.bf16.msra.mxu1 %v3230_v58  ;;  %v3276_v58 = vld [vmem:[%s4049_s1 + $0x5c8] sm:$0xff] }
  0x95   :  { %1982 = vmatpush.bf16.msra.mxu3 %v3246_v59  ;;  %v476_v59 = vunpack.c.l.b16 %v36_v55 }
  0x96   :  { %1944 = vmatpush.bf16.msra.mxu0 %v3221_v60  ;;  %v478_v60 = vunpack.c.l.b16 %v37_v56 }
  0x97   :  { %1970 = vmatpush.bf16.msra.mxu2 %v3237_v61  ;;  %v501_v6 = vpack.c.b16 %v476_v59, %v476_v59 }
  0x98   :  { %1957 = vmatpush.bf16.msra.mxu1 %v3229_v62  ;;  %v3251_v62 = vld [vmem:[%s4049_s1 + $0x500] sm:$0xff]  ;;  %v503_v7 = vpack.c.b16 %v478_v60, %v478_v60  ;;  %v3297_v60 = vld [vmem:[%s4053_s3 + $0x30] sm:$0xff] }
  0x99   :  { %1983 = vmatpush.bf16.msra.mxu3 %v3245_v63  ;;  %v3267_v63 = vld [vmem:[%s4049_s1 + $0x580] sm:$0xff] }
  0x9a   :  { %1945 = vmatpush.bf16.msra.mxu0 %v3220_v0  ;;  %v3290_v0 = vld [vmem:[%s4049_s1 + $0x638] sm:$0xff] }
  0x9b   :  { %1971 = vmatpush.bf16.msra.mxu2 %v3236_v1  ;;  %v477_v1 = vunpack.c.h.b16 %v36_v55 }
  0x9c   :  { %1958 = vmatpush.bf16.msra.mxu1 %v3228_v4  ;;  %v3259_v4 = vld [vmem:[%s4049_s1 + $0x540] sm:$0xff] }
  0x9d   :  { %1984 = vmatpush.bf16.msra.mxu3 %v3244_v5  ;;  %v3275_v5 = vld [vmem:[%s4049_s1 + $0x5c0] sm:$0xff] }
  0x9e   :  { %1946 = vmatpush.bf16.msra.mxu0 %v3219_v8  ;;  %v1740_v33 = vpop.f32.mrf.mxu0  ;;  %v502_v8 = vpack.c.b16 %v477_v1, %v477_v1  ;;  %v3295_v1 = vld [vmem:[%s4053_s3 + $0x20] sm:$0xff] }
  0x9f   :  { %1972 = vmatpush.bf16.msra.mxu2 %v3235_v9  ;;  %v1741_v36 = vadd.f32 %v3307_v30, %v1740_v33  ;;  %v504_v9 = vpack.c.b16 %v479_v2, %v479_v2 }
  0xa0   :  { %1959 = vmatpush.bf16.msra.mxu1 %v3227_v14  ;;  %v1753_v37 = vpop.f32.mrf.mxu1 }
  0xa1   :  { %1985 = vmatpush.bf16.msra.mxu3 %v3243_v15  ;;  %1947 = vmatmul.bf16.vlgmr.msra.gmra.mxu0 %v497_v16  ;;  %v1754_v40 = vadd.f32 %v1753_v37, %v1741_v36 }
  0xa2   :  { %1991 = vmatpush.bf16.msrb.mxu0 %v3258_v10  ;;  %1973 = vmatmul.bf16.vlgmr.msra.gmra.mxu2 %v499_v17  ;;  %v3289_v10 = vld [vmem:[%s4049_s1 + $0x630] sm:$0xff]  ;;  %v3286_v17 = vld [vmem:[%s4049_s1 + $0x618] sm:$0xff] }
  0xa3   :  { %2017 = vmatpush.bf16.msrb.mxu2 %v3274_v11  ;;  %1960 = vmatmul.bf16.vlgmr.msra.gmra.mxu1 %v498_v20  ;;  %v3288_v11 = vld [vmem:[%s4049_s1 + $0x628] sm:$0xff]  ;;  %v3285_v20 = vld [vmem:[%s4049_s1 + $0x610] sm:$0xff] }
  0xa4   :  { %2004 = vmatpush.bf16.msrb.mxu1 %v3266_v18  ;;  %1986 = vmatmul.bf16.vlgmr.msra.gmra.mxu3 %v500_v21 }
  0xa5   :  { %2030 = vmatpush.bf16.msrb.mxu3 %v3282_v19  ;;  %v1766_v43 = vpop.f32.mrf.mxu2 }
  0xa6   :  { %1992 = vmatpush.bf16.msrb.mxu0 %v3257_v22  ;;  %v1767_v46 = vadd.f32 %v1766_v43, %v1754_v40  ;;  %v1742_v48 = vpop.f32.mrf.mxu0 }
  0xa7   :  { %2018 = vmatpush.bf16.msrb.mxu2 %v3273_v23  ;;  %v1779_v47 = vpop.f32.mrf.mxu3 }
  0xa8   :  { %2005 = vmatpush.bf16.msrb.mxu1 %v3265_v24  ;;  %v1780_v51 = vadd.f32 %v1779_v47, %v1767_v46  ;;  %v1755_v53 = vpop.f32.mrf.mxu1 }
  0xa9   :  { %2031 = vmatpush.bf16.msrb.mxu3 %v3281_v25  ;;  %v3284_v25 = vld [vmem:[%s4049_s1 + $0x608] sm:$0xff] }
  0xaa   :  { %1993 = vmatpush.bf16.msrb.mxu0 %v3256_v26  ;;  %v38_v26 = vld [vmem:[%s4050_s0 + $0x60] sm:$0xf] }
  0xab   :  { %2019 = vmatpush.bf16.msrb.mxu2 %v3272_v27 }
  0xac   :  { %2006 = vmatpush.bf16.msrb.mxu1 %v3264_v28  ;;  %v480_v28 = vunpack.c.l.b16 %v38_v26 }
  0xad   :  { %2032 = vmatpush.bf16.msrb.mxu3 %v3280_v29  ;;  %v1768_v61 = vpop.f32.mrf.mxu2  ;;  %v3283_v29 = vld [vmem:[%s4049_s1 + $0x600] sm:$0xff] }
  0xae   :  { %1994 = vmatpush.bf16.msrb.mxu0 %v3255_v31  ;;  %v505_v31 = vpack.c.b16 %v480_v28, %v480_v28 }
  0xaf   :  { %2020 = vmatpush.bf16.msrb.mxu2 %v3271_v32  ;;  %v1781_v3 = vpop.f32.mrf.mxu3 }
  0xb0   :  { %2007 = vmatpush.bf16.msrb.mxu1 %v3263_v34 }
  0xb1   :  { %2033 = vmatpush.bf16.msrb.mxu3 %v3279_v35 }
  0xb2   :  { %1995 = vmatpush.bf16.msrb.mxu0 %v3254_v38 }
  0xb3   :  { %2021 = vmatpush.bf16.msrb.mxu2 %v3270_v39 }
  0xb4   :  { %2008 = vmatpush.bf16.msrb.mxu1 %v3262_v41 }
  0xb5   :  { %2034 = vmatpush.bf16.msrb.mxu3 %v3278_v42 }
  0xb6   :  { %1996 = vmatpush.bf16.msrb.mxu0 %v3253_v44 }
  0xb7   :  { %2022 = vmatpush.bf16.msrb.mxu2 %v3269_v45 }
  0xb8   :  { %2009 = vmatpush.bf16.msrb.mxu1 %v3261_v49 }
  0xb9   :  { %2035 = vmatpush.bf16.msrb.mxu3 %v3277_v50 }
  0xba   :  { %1997 = vmatpush.bf16.msrb.mxu0 %v3252_v52 }
  0xbb   :  { %2023 = vmatpush.bf16.msrb.mxu2 %v3268_v54 }
  0xbc   :  { %2010 = vmatpush.bf16.msrb.mxu1 %v3260_v57  ;;  %v3298_v57 = vld [vmem:[%s4053_s3 + $0x38] sm:$0xff] }
  0xbd   :  { %2036 = vmatpush.bf16.msrb.mxu3 %v3276_v58 }
  0xbe   :  { %1998 = vmatpush.bf16.msrb.mxu0 %v3251_v62  ;;  %v1792_v13 = vpop.f32.mrf.mxu0 }
  0xbf   :  { %2024 = vmatpush.bf16.msrb.mxu2 %v3267_v63  ;;  %v1793_v14 = vadd.f32 %v1792_v13, %v1780_v51  ;;  %v3296_v63 = vld [vmem:[%s4053_s3 + $0x28] sm:$0xff] }
  0xc0   :  { %2011 = vmatpush.bf16.msrb.mxu1 %v3259_v4  ;;  %v1805_v15 = vpop.f32.mrf.mxu1  ;;  %v3294_v4 = vld [vmem:[%s4053_s3 + $0x18] sm:$0xff] }
  0xc1   :  { %2037 = vmatpush.bf16.msrb.mxu3 %v3275_v5  ;;  %1999 = vmatmul.bf16.vlgmr.msrb.gmra.mxu0 %v501_v6  ;;  %v1806_v16 = vadd.f32 %v1805_v15, %v1793_v14  ;;  %v3293_v5 = vld [vmem:[%s4053_s3 + $0x10] sm:$0xff]  ;;  %v3292_v6 = vld [vmem:[%s4053_s3 + $0x8] sm:$0xff] }
  0xc2   :  { %2043 = vmatpush.bf16.msra.mxu0 %v3290_v0  ;;  %2025 = vmatmul.bf16.vlgmr.msrb.gmra.mxu2 %v503_v7  ;;  %v3305_v15 = vld [vmem:[%s4054_s5 + $0x30] sm:$0xff] }
  0xc3   :  { %2012 = vmatmul.bf16.vlgmr.msrb.gmra.mxu1 %v502_v8  ;;  %v3291_v8 = vld [vmem:[%s4053_s3] sm:$0xff] }
  0xc4   :  { %2038 = vmatmul.bf16.vlgmr.msrb.gmra.mxu3 %v504_v9  ;;  %2126 = vmatpush.bf16.msra.mxu1 %v3298_v57 }
  0xc5   :  { %v1818_v18 = vpop.f32.mrf.mxu2 }
  0xc6   :  { %2044 = vmatpush.bf16.msra.mxu0 %v3289_v10  ;;  %v1819_v19 = vadd.f32 %v1818_v18, %v1806_v16  ;;  %v1794_v22 = vpop.f32.mrf.mxu0  ;;  %v3304_v18 = vld [vmem:[%s4054_s5 + $0x28] sm:$0xff] }
  0xc7   :  { %v1831_v21 = vpop.f32.mrf.mxu3  ;;  %v3303_v22 = vld [vmem:[%s4054_s5 + $0x20] sm:$0xff] }
  0xc8   :  { %v1832_v23 = vadd.f32 %v1831_v21, %v1819_v19  ;;  %v1807_v24 = vpop.f32.mrf.mxu1  ;;  %2127 = vmatpush.bf16.msra.mxu1 %v3297_v60 }
  0xca   :  { %2045 = vmatpush.bf16.msra.mxu0 %v3288_v11  ;;  %v3306_v11 = vld [vmem:[%s4054_s5 + $0x38] sm:$0xff] }
  0xcb   :  { %2209 = vmatpush.bf16.msra.mxu2 %v3306_v11 }
  0xcc   :  { %2128 = vmatpush.bf16.msra.mxu1 %v3296_v63 }
  0xcd   :  { %v1820_v27 = vpop.f32.mrf.mxu2 }
  0xce   :  { %2046 = vmatpush.bf16.msra.mxu0 %v3287_v12  ;;  %v3301_v27 = vld [vmem:[%s4054_s5 + $0x10] sm:$0xff] }
  0xcf   :  { %v1833_v30 = vpop.f32.mrf.mxu3  ;;  %2210 = vmatpush.bf16.msra.mxu2 %v3305_v15 }
  0xd0   :  { %2129 = vmatpush.bf16.msra.mxu1 %v3295_v1 }
  0xd2   :  { %2047 = vmatpush.bf16.msra.mxu0 %v3286_v17 }
  0xd3   :  { %2211 = vmatpush.bf16.msra.mxu2 %v3304_v18 }
  0xd4   :  { %2130 = vmatpush.bf16.msra.mxu1 %v3294_v4 }
  0xd6   :  { %2048 = vmatpush.bf16.msra.mxu0 %v3285_v20 }
  0xd7   :  { %2212 = vmatpush.bf16.msra.mxu2 %v3303_v22 }
  0xd8   :  { %2131 = vmatpush.bf16.msra.mxu1 %v3293_v5 }
  0xda   :  { %2049 = vmatpush.bf16.msra.mxu0 %v3284_v25  ;;  %v3302_v25 = vld [vmem:[%s4054_s5 + $0x18] sm:$0xff] }
  0xdb   :  { %2213 = vmatpush.bf16.msra.mxu2 %v3302_v25 }
  0xdc   :  { %2132 = vmatpush.bf16.msra.mxu1 %v3292_v6 }
  0xde   :  { %2050 = vmatpush.bf16.msra.mxu0 %v3283_v29  ;;  %v1844_v32 = vpop.f32.mrf.mxu0 }
  0xdf   :  { %v1845_v33 = vadd.f32 %v1844_v32, %v1832_v23  ;;  %2214 = vmatpush.bf16.msra.mxu2 %v3301_v27 }
  0xe0   :  { %v1857_v34 = vpop.f32.mrf.mxu1  ;;  %2133 = vmatpush.bf16.msra.mxu1 %v3291_v8 }
  0xe1   :  { %2051 = vmatmul.bf16.vlgmr.msra.gmra.mxu0 %v505_v31  ;;  %v1858_v35 = vadd.f32 %v1857_v34, %v1845_v33 }
  0xe5   :  { %v1870_v36 = vpop.f32.mrf.mxu2 }
  0xe6   :  { %v1871_v37 = vadd.f32 %v1870_v36, %v1858_v35  ;;  %v1846_v39 = vpop.f32.mrf.mxu0  ;;  %v3300_v35 = vld [vmem:[%s4054_s5 + $0x8] sm:$0xff]  ;;  %v3299_v36 = vld [vmem:[%s4054_s5] sm:$0xff] }
  0xe7   :  { %v1883_v38 = vpop.f32.mrf.mxu3  ;;  %2215 = vmatpush.bf16.msra.mxu2 %v3300_v35 }
  0xe8   :  { %v1884_v40 = vadd.f32 %v1883_v38, %v1871_v37  ;;  %v1859_v41 = vpop.f32.mrf.mxu1  ;;  %v3308_v37 = vld [vmem:[%s4052_s4] ss:$0 sm:$0xff] }
  0xeb   :  { %2216 = vmatpush.bf16.msra.mxu2 %v3299_v36 }
  0xed   :  { %v1872_v42 = vpop.f32.mrf.mxu2 }
  0xef   :  { %v1885_v43 = vpop.f32.mrf.mxu3 }
  0xf0   :  { %v3309_v43 = vld [vmem:[%s4055_s6] ss:$0 sm:$0xff] }
  0xfe   :  { %v1896_v44 = vpop.f32.mrf.mxu0 }
  0xff   :  { %v1897_v45 = vadd.f32 %v1896_v44, %v1884_v40 }
 0x100   :  { %v1909_v46 = vpop.f32.mrf.mxu1 }
 0x101   :  { %v1910_v47 = vadd.f32 %v1909_v46, %v1897_v45 }
 0x105   :  { %v1922_v48 = vpop.f32.mrf.mxu2 }
 0x106   :  { %v1923_v49 = vadd.f32 %v1922_v48, %v1910_v47  ;;  %v1898_v51 = vpop.f32.mrf.mxu0 }
 0x107   :  { %v1935_v50 = vpop.f32.mrf.mxu3 }
 0x108   :  { %v1936_v52 = vadd.f32 %v1935_v50, %v1923_v49  ;;  %v1911_v53 = vpop.f32.mrf.mxu1 }
 0x10d   :  { %v1924_v54 = vpop.f32.mrf.mxu2 }
 0x10f   :  { %v1937_v55 = vpop.f32.mrf.mxu3 }
 0x11e   :  { %v1948_v56 = vpop.f32.mrf.mxu0 }
 0x11f   :  { %v1949_v12 = vadd.f32 %v1948_v56, %v1936_v52 }
 0x120   :  { %v1961_v58 = vpop.f32.mrf.mxu1 }
 0x121   :  { %v1962_v17 = vadd.f32 %v1961_v58, %v1949_v12 }
 0x125   :  { %v1974_v59 = vpop.f32.mrf.mxu2 }
 0x126   :  { %v1950_v62 = vpop.f32.mrf.mxu0  ;;  %v1975_v19 = vadd.f32 %v1974_v59, %v1962_v17 }
 0x127   :  { %v1987_v61 = vpop.f32.mrf.mxu3 }
 0x128   :  { %v1963_v0 = vpop.f32.mrf.mxu1  ;;  %v1988_v23 = vadd.f32 %v1987_v61, %v1975_v19 }
 0x12d   :  { %v1976_v2 = vpop.f32.mrf.mxu2 }
 0x12f   :  { %v1989_v3 = vpop.f32.mrf.mxu3 }
 0x13e   :  { %v2000_v7 = vpop.f32.mrf.mxu0 }
 0x13f   :  { %v2001_v24 = vadd.f32 %v2000_v7, %v1988_v23 }
 0x140   :  { %v2013_v9 = vpop.f32.mrf.mxu1 }
 0x141   :  { %v2014_v26 = vadd.f32 %v2013_v9, %v2001_v24 }
 0x145   :  { %v2026_v10 = vpop.f32.mrf.mxu2 }
 0x146   :  { %v2002_v14 = vpop.f32.mrf.mxu0  ;;  %v2027_v28 = vadd.f32 %v2026_v10, %v2014_v26 }
 0x147   :  { %v2039_v13 = vpop.f32.mrf.mxu3 }
 0x148   :  { %v2015_v16 = vpop.f32.mrf.mxu1  ;;  %v2040_v29 = vadd.f32 %v2039_v13, %v2027_v28 }
 0x14d   :  { %v2028_v20 = vpop.f32.mrf.mxu2 }
 0x14f   :  { %v2041_v21 = vpop.f32.mrf.mxu3 }
 0x15e   :  { %v2052_v30 = vpop.f32.mrf.mxu0 }
 0x15f   :  { %v2053_v31 = vadd.f32 %v2052_v30, %v2040_v29 }
 0x161   :  { %v2056_v32 = vmax.f32 %v2053_v31, 0.0 }
 0x163   :  { %v2057_v33 = vpack.c.bf16 %v2056_v32, %v2056_v32 }
 0x165   :  { %2134 = vmatmul.bf16.vlgmr.msra.gmra.mxu1 %v2057_v33 }
 0x166   :  { %v2054_v34 = vpop.f32.mrf.mxu0 }
 0x1e2   :  { %v2135_v38 = vpop.f32.mrf.mxu1 }
 0x1e3   :  { %v2136_v39 = vadd.f32 %v3308_v37, %v2135_v38 }
 0x1e5   :  { %v2139_v40 = vmax.f32 %v2136_v39, 0.0 }
 0x1e7   :  { %v2140_v41 = vpack.c.bf16 %v2139_v40, %v2139_v40 }
 0x1e9   :  { %2217 = vmatmul.bf16.vlgmr.msra.gmra.mxu2 %v2140_v41 }
 0x1ea   :  { %v2137_v42 = vpop.f32.mrf.mxu1 }
 0x26c   :  { %v2218_v44 = vpop.f32.mrf.mxu2 }
 0x26d   :  { %v2219_v45 = vadd.f32 %v3309_v43, %v2218_v44 }
 0x26f   :  { %2222 = vst [vmem:[%s4056_s7] sm:$0xff] %v2219_v45 }
 0x274   :  { %v2220_v46 = vpop.f32.mrf.mxu2 }

</bundles_post_ra>
